<compile_context>
chip_gen: v6e
topology: v6e:2x2x1
jax: 0.10.0
libtpu: 0.0.40
codegen_flags: <defaults>
</compile_context>

<pallas_src>
import functools

import numpy as np

import jax
import jax.numpy as jnp
from jax.experimental import pallas as pl
from jax.experimental.pallas import tpu as pltpu

NUM_CHANNELS = 100             # conv out channels (as in the PyTorch module)
NUM_CLASSES = 4
KERNEL_SIZES = (3, 4, 5)
NUM_SLOTS = sum(KERNEL_SIZES)  # 12 (branch, tap) weight slots
CP = 128                       # channel dim padded to one full lane tile


# ----------------------------------------------------------------------------
# pltpu.roll convention -- probed once, EAGERLY, at import time (never under a
# trace), so the XLU-rotate path is always used on TPU.
# ----------------------------------------------------------------------------
def _roll_probe_kernel(x_ref, o_ref):
    o_ref[...] = pltpu.roll(x_ref[...], shift=1, axis=1)


def _detect_roll_mode():
    """'jnp' if pltpu.roll matches jnp.roll, 'rev' if it rotates the other
    way, 'fallback' only if the probe could not run at all (non-TPU)."""
    try:
        x = jnp.arange(8 * 128, dtype=jnp.float32).reshape(1, 8, 128)
        vmem = pl.BlockSpec(memory_space=pltpu.MemorySpace.VMEM)
        y = np.asarray(pl.pallas_call(
            _roll_probe_kernel,
            out_shape=jax.ShapeDtypeStruct(x.shape, x.dtype),
            in_specs=[vmem],
            out_specs=vmem,
        )(x))
        xh = np.asarray(x)
        if np.array_equal(y, np.roll(xh, 1, axis=1)):
            return "jnp"
        if np.array_equal(y, np.roll(xh, -1, axis=1)):
            return "rev"
    except Exception:
        pass
    return "fallback"


_ROLL_MODE = _detect_roll_mode()   # concrete, cached, outside any jit trace


def _shift_time(p, kk, lp, roll_mode):
    """q[:, t, :] == p[:, (t + kk) % lp, :]; wrapped rows are masked by the
    caller before the time max."""
    if kk == 0:
        return p
    if roll_mode == "jnp":
        return pltpu.roll(p, shift=(lp - kk) % lp, axis=1)
    if roll_mode == "rev":
        return pltpu.roll(p, shift=kk, axis=1)
    return jnp.roll(p, -kk, axis=1)   # never taken on TPU (probe resolves it)


# ----------------------------------------------------------------------------
# Kernel
# ----------------------------------------------------------------------------
def textcnn_kernel(x_ref, w_ref, b_ref, wl_ref, bl_ref, out_ref, *,
                   length, roll_mode):
    tb, lp, emb = x_ref.shape
    # lp % 8 == 0 (wrapper pads), so this reshape is a sublane-aligned view.
    x2d = x_ref[...].reshape(tb * lp, emb)             # bf16
    w = w_ref[...]                                     # (E, 12*128) bf16

    # Small (1, Lp, 1) time iota; jnp.where broadcasts it over batch / lanes.
    t_idx = jax.lax.broadcasted_iota(jnp.int32, (1, lp, 1), 1)

    pooled = []
    slot = 0
    for m, k in enumerate(KERNEL_SIZES):
        # One bf16 MXU matmul per branch (all k taps side by side, k*128 lanes)
        # -> peak live f32 projection is only k*128 wide.
        proj = jnp.dot(x2d, w[:, slot * CP:(slot + k) * CP],
                       preferred_element_type=jnp.float32)
        proj = proj.reshape(tb, lp, k * CP)            # sublane-aligned view
        slot += k

        # conv_k[:, t, :] = sum_kk proj[:, t + kk, tap kk]; taps aligned with
        # cheap XLU rotates (wrapped rows masked below, before the max).
        s = proj[:, :, :CP]
        for kk in range(1, k):
            s = s + _shift_time(proj[:, :, kk * CP:(kk + 1) * CP],
                                kk, lp, roll_mode)

        # Mask invalid / padded tail, MaxPool over time, then bias + ReLU
        # (bias and ReLU commute with the max: both are monotone).
        valid_t = length - k + 1
        s = jnp.where(t_idx < valid_t, s, -jnp.inf)
        p = jnp.max(s, axis=1)
        pooled.append(jnp.maximum(p + b_ref[:, m * CP:(m + 1) * CP], 0.0))

    # Single final linear: (tb, 3*128) @ (3*128, 128).  The concat is
    # 128-lane aligned (vreg granularity, no cross-lane shuffles, no scratch).
    feat = jnp.concatenate(pooled, axis=-1).astype(jnp.bfloat16)
    logits = jnp.dot(feat, wl_ref[...], preferred_element_type=jnp.float32)
    out_ref[...] = logits + bl_ref[...]

    # TODO(synk): training-mode dropout (p=0.5) not implemented; eval semantics.


# ----------------------------------------------------------------------------
# Chip-aware tiling / VMEM budgeting
# ----------------------------------------------------------------------------
def _round_up(x, m):
    return (x + m - 1) // m * m


def _vmem_limit_bytes():
    """~3/4 of physical VMEM, capped at 96 MiB: ~48 MiB on v7x (64 MiB/TC),
    96 MiB on v5e/v6e (128 MiB)."""
    cap = None
    try:
        cap = getattr(pltpu.get_tpu_info(), "vmem_capacity_bytes", None)
    except Exception:
        cap = None
    if not cap:
        cap = 64 * 1024 * 1024            # conservative default (v7x per-TC)
    return max(32 * 1024 * 1024, min(int(cap) * 3 // 4, 96 * 1024 * 1024))


def _select_tiling(batch, lp, emb, vmem_limit):
    """(tile_b, num_blocks): VMEM-budget-bounded batch tile (multiple of 8),
    with >= 2 grid steps whenever batch >= 2 (v7x dual TensorCore)."""
    per_row = (lp * (max(KERNEL_SIZES) + 2) * CP * 4   # widest f32 proj + sum + shifted tap
               + 2 * lp * emb * 2                      # double-buffered bf16 x tile
               + 2 * 4 * CP * 4)                       # pooled features / out block
    weights = 2 * 2 * (emb * NUM_SLOTS * CP + 3 * CP * CP)   # bf16, double-buffered
    budget = max(per_row * 8, vmem_limit - weights - (4 << 20))
    max_tile = max(8, (budget // per_row) // 8 * 8)
    min_blocks = 2 if batch >= 2 else 1
    nb = max(min_blocks, -(-batch // max_tile))
    tile = min(max_tile, _round_up(-(-batch // nb), 8))
    nb = max(min_blocks, -(-batch // tile))
    return int(tile), int(nb)


# ----------------------------------------------------------------------------
# Wrapper
# ----------------------------------------------------------------------------
def cnn_forward(x_nchw, params, *, tile_b=None):
    """x_nchw: (B, 1, L, E) float32 (PyTorch NCHW input with in_channels=1)."""
    x = jnp.squeeze(x_nchw, axis=1)                    # (B, L, E)
    B, L, E = x.shape
    # NOTE: if L < 5 the PyTorch module would error; here the short branch
    # just contributes zeros (fully masked -> ReLU -> 0).
    Lp = _round_up(L, 8)
    w_all, b_all, wl, bl = params

    vmem_limit = _vmem_limit_bytes()
    if tile_b is None:
        tile_b, nb = _select_tiling(B, Lp, E, vmem_limit)
    else:
        nb = max(1, pl.cdiv(B, tile_b))
    Bp = tile_b * nb

    # Zero-pad batch to whole tiles and L to a sublane multiple; cast to bf16
    # for the MXU (halves the x DMA bytes).
    x = jnp.pad(x, ((0, Bp - B), (0, Lp - L), (0, 0))).astype(jnp.bfloat16)

    flops = 2 * Bp * Lp * E * NUM_SLOTS * CP + 2 * Bp * 3 * CP * CP
    bytes_accessed = (x.size * 2 + w_all.size * 2 + wl.size * 2
                      + (b_all.size + bl.size + Bp * CP) * 4)

    out = pl.pallas_call(
        functools.partial(textcnn_kernel, length=L, roll_mode=_ROLL_MODE),
        out_shape=jax.ShapeDtypeStruct((Bp, CP), jnp.float32),
        grid=(nb,),
        in_specs=[
            pl.BlockSpec((tile_b, Lp, E), lambda i: (i, 0, 0)),    # x tile (bf16)
            pl.BlockSpec((E, NUM_SLOTS * CP), lambda i: (0, 0)),   # fused conv W (bf16)
            pl.BlockSpec((1, 3 * CP), lambda i: (0, 0)),           # conv biases (f32)
            pl.BlockSpec((3 * CP, CP), lambda i: (0, 0)),          # linear W (bf16)
            pl.BlockSpec((1, CP), lambda i: (0, 0)),               # linear bias (f32)
        ],
        out_specs=pl.BlockSpec((tile_b, CP), lambda i: (i, 0)),    # lane-dense
        compiler_params=pltpu.CompilerParams(
            dimension_semantics=("parallel",),
            vmem_limit_bytes=vmem_limit,
        ),
        cost_estimate=pl.CostEstimate(flops=flops, transcendentals=0,
                                      bytes_accessed=bytes_accessed),
    )(x, w_all, b_all, wl, bl)
    return out[:B, :NUM_CLASSES]


# ----------------------------------------------------------------------------
# Parameters (PyTorch layouts) + packing into the kernel layout
# ----------------------------------------------------------------------------
def init_torch_params(key, input_size, channels=NUM_CHANNELS,
                      num_classes=NUM_CLASSES):
    """Deterministic synthetic parameters with PyTorch-equivalent shapes."""
    ks = jax.random.split(key, 8)
    p = {}
    for i, k in enumerate(KERNEL_SIZES):
        p[f"w{k}"] = 0.1 * jax.random.normal(
            ks[2 * i], (channels, 1, k, input_size), jnp.float32)
        p[f"b{k}"] = 0.1 * jax.random.normal(ks[2 * i + 1], (channels,),
                                             jnp.float32)
    p["wl"] = 0.1 * jax.random.normal(ks[6], (num_classes, 3 * channels),
                                      jnp.float32)
    p["bl"] = 0.1 * jax.random.normal(ks[7], (num_classes,), jnp.float32)
    return p


def pack_params(p, channels=NUM_CHANNELS, num_classes=NUM_CLASSES):
    """Convert PyTorch-layout params into the lane-aligned kernel layout."""
    slots = []
    for k in KERNEL_SIZES:
        wt = jnp.transpose(p[f"w{k}"][:, 0], (1, 2, 0))      # (k, E, C)
        wt = jnp.pad(wt, ((0, 0), (0, 0), (0, CP - channels)))
        slots.extend(wt[kk] for kk in range(k))               # (E, 128) per tap
    w_all = jnp.concatenate(slots, axis=1).astype(jnp.bfloat16)  # (E, 12*128)

    b_all = jnp.concatenate(
        [jnp.pad(p[f"b{k}"], (0, CP - channels))
         for k in KERNEL_SIZES])[None, :].astype(jnp.float32)

    # PyTorch: cat((x1,x2,x3), -1) on (B,100,1,1) -> (B,100,1,3), then
    # .view(B,-1) interleaves features as j = 3*c + m.  Kernel slots are
    # branch-major (r = m*128 + c): permute + zero-pad the linear weight rows
    # and pad the 4 classes to 128 lanes.
    wl = jnp.zeros((3 * CP, CP), jnp.float32)
    for m in range(3):
        cols = p["wl"][:, m::3]                               # (4, channels)
        wl = wl.at[m * CP:m * CP + channels, :num_classes].set(cols.T)
    wl = wl.astype(jnp.bfloat16)
    bl = jnp.zeros((1, CP), jnp.float32).at[0, :num_classes].set(p["bl"])
    return (w_all, b_all, wl, bl)


def cnn_reference(x_nchw, p, channels=NUM_CHANNELS):
    """Pure-JAX f32 forward mirroring the PyTorch module (eval mode)."""
    x = x_nchw[:, 0].astype(jnp.float32)                      # (B, L, E)
    B, L, _ = x.shape
    pooled = []
    for k in KERNEL_SIZES:
        wt = jnp.transpose(p[f"w{k}"][:, 0], (1, 2, 0))       # (k, E, C)
        T = L - k + 1
        conv = sum(jnp.einsum("ble,ec->blc", x[:, kk:kk + T, :], wt[kk])
                   for kk in range(k)) + p[f"b{k}"][None, None, :]
        pooled.append(jnp.max(jax.nn.relu(conv), axis=1))     # (B, C)
    feat = jnp.stack(pooled, axis=-1).reshape(B, -1)          # torch cat/view
    return feat @ p["wl"].T + p["bl"][None, :]


if __name__ == "__main__":
    # Small shapes consistent with the module: batch=2, seq length=8, embed=32.
    B, L, E = 2, 8, 32
    key = jax.random.PRNGKey(0)
    kx, kp = jax.random.split(key)

    x = jax.random.normal(kx, (B, 1, L, E), jnp.float32)      # NCHW, C=1
    torch_params = init_torch_params(kp, E)
    params = pack_params(torch_params)

    out = jax.block_until_ready(cnn_forward(x, params))
    assert out.shape == (B, NUM_CLASSES) and out.dtype == jnp.float32

    ref = cnn_reference(x, torch_params)
    max_err = float(jnp.max(jnp.abs(out - ref)))
    # bf16 MXU operands -> slightly looser tolerance than a pure-f32 check.
    assert jnp.allclose(out, ref, rtol=5e-2, atol=1e-1), (
        f"kernel/reference mismatch: max abs err {max_err}")
    print("KERNEL_OK")
</pallas_src>

<mosaic_0001>
module attributes {stable_mosaic.version = 11 : i64} {
  func.func @_roll_probe_kernel(%arg0: memref<1x8x128xf32, #tpu.memory_space<vmem>>, %arg1: memref<1x8x128xf32, #tpu.memory_space<vmem>>) attributes {dimension_semantics = [], scalar_prefetch = 0 : i64, scratch_operands = 0 : i64, tpu.core_type = #tpu.core_type<tc>} {
    %c0 = arith.constant 0 : index
    %c0_0 = arith.constant 0 : index
    %c0_1 = arith.constant 0 : index
    %0 = vector.load %arg0[%c0, %c0_0, %c0_1] : memref<1x8x128xf32, #tpu.memory_space<vmem>>, vector<1x8x128xf32>
    %c1_i32 = arith.constant 1 : i32
    %1 = tpu.dynamic_rotate %0 by %c1_i32 dim 1 : vector<1x8x128xf32>, i32 -> vector<1x8x128xf32>
    %c0_2 = arith.constant 0 : index
    %c0_3 = arith.constant 0 : index
    %c0_4 = arith.constant 0 : index
    %2 = vector.load %arg1[%c0_2, %c0_3, %c0_4] : memref<1x8x128xf32, #tpu.memory_space<vmem>>, vector<1x8x128xf32>
    tpu.vector_store %arg1[%c0_2, %c0_3, %c0_4], %1 {strides = array<i32>} : memref<1x8x128xf32, #tpu.memory_space<vmem>>, vector<1x8x128xf32>,
    return
  }
}

module attributes {stable_mosaic.version = 11 : i64} {
  func.func @textcnn_kernel(%arg0: i32, %arg1: memref<8x8x32xbf16, #tpu.memory_space<vmem>>, %arg2: memref<32x1536xbf16, #tpu.memory_space<vmem>>, %arg3: memref<1x384xf32, #tpu.memory_space<vmem>>, %arg4: memref<384x128xbf16, #tpu.memory_space<vmem>>, %arg5: memref<1x128xf32, #tpu.memory_space<vmem>>, %arg6: memref<8x128xf32, #tpu.memory_space<vmem>>) attributes {dimension_semantics = [#tpu.dimension_semantics<parallel>], iteration_bounds = array<i64: 2>, scalar_prefetch = 0 : i64, scratch_operands = 0 : i64, tpu.core_type = #tpu.core_type<tc>, window_params = [{transform_indices = @transform_0, window_bounds = array<i64: 8, 8, 32>}, {pipeline_mode = #tpu.pipeline_mode<synchronous>, transform_indices = @transform_1, window_bounds = array<i64: 32, 1536>}, {pipeline_mode = #tpu.pipeline_mode<synchronous>, transform_indices = @transform_2, window_bounds = array<i64: 1, 384>}, {pipeline_mode = #tpu.pipeline_mode<synchronous>, transform_indices = @transform_3, window_bounds = array<i64: 384, 128>}, {pipeline_mode = #tpu.pipeline_mode<synchronous>, transform_indices = @transform_4, window_bounds = array<i64: 1, 128>}, {transform_indices = @transform_5, window_bounds = array<i64: 8, 128>}]} {
    %c0 = arith.constant 0 : index
    %c0_0 = arith.constant 0 : index
    %c0_1 = arith.constant 0 : index
    %0 = vector.load %arg1[%c0, %c0_0, %c0_1] : memref<8x8x32xbf16, #tpu.memory_space<vmem>>, vector<8x8x32xbf16>
    %1 = vector.shape_cast %0 : vector<8x8x32xbf16> to vector<64x32xbf16>
    %c0_2 = arith.constant 0 : index
    %c0_3 = arith.constant 0 : index
    %2 = vector.load %arg2[%c0_2, %c0_3] : memref<32x1536xbf16, #tpu.memory_space<vmem>>, vector<32x1536xbf16>
    %3 = tpu.iota {dimensions = array<i32: 1>} : vector<1x8x1xi32>
    %4 = vector.extract_strided_slice %2 {offsets = [0, 0], sizes = [32, 384], strides = [1, 1]} : vector<32x1536xbf16> to vector<32x384xbf16>
    %cst = arith.constant dense<0.000000e+00> : vector<64x384xf32>
    %5 = tpu.matmul %1, %4, %cst {dimension_numbers = #tpu.dot_dimension_numbers<[1], [0], [0], [1], [0, 0, 1, 1], [], []>} : vector<64x32xbf16>, vector<32x384xbf16>, vector<64x384xf32> -> vector<64x384xf32>
    %6 = vector.shape_cast %5 : vector<64x384xf32> to vector<8x8x384xf32>
    %7 = vector.extract_strided_slice %6 {offsets = [0, 0, 0], sizes = [8, 8, 128], strides = [1, 1, 1]} : vector<8x8x384xf32> to vector<8x8x128xf32>
    %8 = vector.extract_strided_slice %6 {offsets = [0, 0, 128], sizes = [8, 8, 128], strides = [1, 1, 1]} : vector<8x8x384xf32> to vector<8x8x128xf32>
    %9 = vector.extract_strided_slice %8 {offsets = [0, 1, 0], sizes = [8, 7, 128], strides = [1, 1, 1]} : vector<8x8x128xf32> to vector<8x7x128xf32>
    %10 = vector.extract_strided_slice %8 {offsets = [0, 0, 0], sizes = [8, 1, 128], strides = [1, 1, 1]} : vector<8x8x128xf32> to vector<8x1x128xf32>
    %11 = tpu.concatenate %9, %10 in 1 : vector<8x7x128xf32>, vector<8x1x128xf32> -> vector<8x8x128xf32>
    %12 = arith.addf %7, %11 : vector<8x8x128xf32>
    %13 = vector.extract_strided_slice %6 {offsets = [0, 0, 256], sizes = [8, 8, 128], strides = [1, 1, 1]} : vector<8x8x384xf32> to vector<8x8x128xf32>
    %14 = vector.extract_strided_slice %13 {offsets = [0, 2, 0], sizes = [8, 6, 128], strides = [1, 1, 1]} : vector<8x8x128xf32> to vector<8x6x128xf32>
    %15 = vector.extract_strided_slice %13 {offsets = [0, 0, 0], sizes = [8, 2, 128], strides = [1, 1, 1]} : vector<8x8x128xf32> to vector<8x2x128xf32>
    %16 = tpu.concatenate %14, %15 in 1 : vector<8x6x128xf32>, vector<8x2x128xf32> -> vector<8x8x128xf32>
    %17 = arith.addf %12, %16 : vector<8x8x128xf32>
    %c6_i32 = arith.constant 6 : i32
    %18 = vector.broadcast %c6_i32 : i32 to vector<1x8x1xi32>
    %19 = arith.cmpi slt, %3, %18 : vector<1x8x1xi32>
    %cst_4 = arith.constant 0xFF800000 : f32
    %20 = vector.shape_cast %19 : vector<1x8x1xi1> to vector<1x8x1xi1>
    %21 = vector.broadcast %20 : vector<1x8x1xi1> to vector<8x8x128xi1>
    %22 = vector.broadcast %cst_4 : f32 to vector<8x8x128xf32>
    %23 = arith.select %21, %17, %22 : vector<8x8x128xi1>, vector<8x8x128xf32>
    %cst_5 = arith.constant dense<0xFF800000> : vector<8x128xf32>
    %24 = vector.multi_reduction <maximumf>, %23, %cst_5 [1] : vector<8x8x128xf32> to vector<8x128xf32>
    %c0_6 = arith.constant 0 : index
    %c0_7 = arith.constant 0 : index
    %25 = vector.load %arg3[%c0_6, %c0_7] : memref<1x384xf32, #tpu.memory_space<vmem>>, vector<1x128xf32>
    %26 = vector.broadcast %25 : vector<1x128xf32> to vector<8x128xf32>
    %27 = arith.addf %24, %26 : vector<8x128xf32>
    %cst_8 = arith.constant 0.000000e+00 : f32
    %28 = vector.broadcast %cst_8 : f32 to vector<8x128xf32>
    %29 = arith.maximumf %27, %28 : vector<8x128xf32>
    %30 = vector.extract_strided_slice %2 {offsets = [0, 384], sizes = [32, 512], strides = [1, 1]} : vector<32x1536xbf16> to vector<32x512xbf16>
    %cst_9 = arith.constant dense<0.000000e+00> : vector<64x512xf32>
    %31 = tpu.matmul %1, %30, %cst_9 {dimension_numbers = #tpu.dot_dimension_numbers<[1], [0], [0], [1], [0, 0, 1, 1], [], []>} : vector<64x32xbf16>, vector<32x512xbf16>, vector<64x512xf32> -> vector<64x512xf32>
    %32 = vector.shape_cast %31 : vector<64x512xf32> to vector<8x8x512xf32>
    %33 = vector.extract_strided_slice %32 {offsets = [0, 0, 0], sizes = [8, 8, 128], strides = [1, 1, 1]} : vector<8x8x512xf32> to vector<8x8x128xf32>
    %34 = vector.extract_strided_slice %32 {offsets = [0, 0, 128], sizes = [8, 8, 128], strides = [1, 1, 1]} : vector<8x8x512xf32> to vector<8x8x128xf32>
    %35 = vector.extract_strided_slice %34 {offsets = [0, 1, 0], sizes = [8, 7, 128], strides = [1, 1, 1]} : vector<8x8x128xf32> to vector<8x7x128xf32>
    %36 = vector.extract_strided_slice %34 {offsets = [0, 0, 0], sizes = [8, 1, 128], strides = [1, 1, 1]} : vector<8x8x128xf32> to vector<8x1x128xf32>
    %37 = tpu.concatenate %35, %36 in 1 : vector<8x7x128xf32>, vector<8x1x128xf32> -> vector<8x8x128xf32>
    %38 = arith.addf %33, %37 : vector<8x8x128xf32>
    %39 = vector.extract_strided_slice %32 {offsets = [0, 0, 256], sizes = [8, 8, 128], strides = [1, 1, 1]} : vector<8x8x512xf32> to vector<8x8x128xf32>
    %40 = vector.extract_strided_slice %39 {offsets = [0, 2, 0], sizes = [8, 6, 128], strides = [1, 1, 1]} : vector<8x8x128xf32> to vector<8x6x128xf32>
    %41 = vector.extract_strided_slice %39 {offsets = [0, 0, 0], sizes = [8, 2, 128], strides = [1, 1, 1]} : vector<8x8x128xf32> to vector<8x2x128xf32>
    %42 = tpu.concatenate %40, %41 in 1 : vector<8x6x128xf32>, vector<8x2x128xf32> -> vector<8x8x128xf32>
    %43 = arith.addf %38, %42 : vector<8x8x128xf32>
    %44 = vector.extract_strided_slice %32 {offsets = [0, 0, 384], sizes = [8, 8, 128], strides = [1, 1, 1]} : vector<8x8x512xf32> to vector<8x8x128xf32>
    %45 = vector.extract_strided_slice %44 {offsets = [0, 3, 0], sizes = [8, 5, 128], strides = [1, 1, 1]} : vector<8x8x128xf32> to vector<8x5x128xf32>
    %46 = vector.extract_strided_slice %44 {offsets = [0, 0, 0], sizes = [8, 3, 128], strides = [1, 1, 1]} : vector<8x8x128xf32> to vector<8x3x128xf32>
    %47 = tpu.concatenate %45, %46 in 1 : vector<8x5x128xf32>, vector<8x3x128xf32> -> vector<8x8x128xf32>
    %48 = arith.addf %43, %47 : vector<8x8x128xf32>
    %c5_i32 = arith.constant 5 : i32
    %49 = vector.broadcast %c5_i32 : i32 to vector<1x8x1xi32>
    %50 = arith.cmpi slt, %3, %49 : vector<1x8x1xi32>
    %cst_10 = arith.constant 0xFF800000 : f32
    %51 = vector.shape_cast %50 : vector<1x8x1xi1> to vector<1x8x1xi1>
    %52 = vector.broadcast %51 : vector<1x8x1xi1> to vector<8x8x128xi1>
    %53 = vector.broadcast %cst_10 : f32 to vector<8x8x128xf32>
    %54 = arith.select %52, %48, %53 : vector<8x8x128xi1>, vector<8x8x128xf32>
    %cst_11 = arith.constant dense<0xFF800000> : vector<8x128xf32>
    %55 = vector.multi_reduction <maximumf>, %54, %cst_11 [1] : vector<8x8x128xf32> to vector<8x128xf32>
    %c0_12 = arith.constant 0 : index
    %c128 = arith.constant 128 : index
    %56 = vector.load %arg3[%c0_12, %c128] : memref<1x384xf32, #tpu.memory_space<vmem>>, vector<1x128xf32>
    %57 = vector.broadcast %56 : vector<1x128xf32> to vector<8x128xf32>
    %58 = arith.addf %55, %57 : vector<8x128xf32>
    %cst_13 = arith.constant 0.000000e+00 : f32
    %59 = vector.broadcast %cst_13 : f32 to vector<8x128xf32>
    %60 = arith.maximumf %58, %59 : vector<8x128xf32>
    %61 = vector.extract_strided_slice %2 {offsets = [0, 896], sizes = [32, 640], strides = [1, 1]} : vector<32x1536xbf16> to vector<32x640xbf16>
    %cst_14 = arith.constant dense<0.000000e+00> : vector<64x640xf32>
    %62 = tpu.matmul %1, %61, %cst_14 {dimension_numbers = #tpu.dot_dimension_numbers<[1], [0], [0], [1], [0, 0, 1, 1], [], []>} : vector<64x32xbf16>, vector<32x640xbf16>, vector<64x640xf32> -> vector<64x640xf32>
    %63 = vector.shape_cast %62 : vector<64x640xf32> to vector<8x8x640xf32>
    %64 = vector.extract_strided_slice %63 {offsets = [0, 0, 0], sizes = [8, 8, 128], strides = [1, 1, 1]} : vector<8x8x640xf32> to vector<8x8x128xf32>
    %65 = vector.extract_strided_slice %63 {offsets = [0, 0, 128], sizes = [8, 8, 128], strides = [1, 1, 1]} : vector<8x8x640xf32> to vector<8x8x128xf32>
    %66 = vector.extract_strided_slice %65 {offsets = [0, 1, 0], sizes = [8, 7, 128], strides = [1, 1, 1]} : vector<8x8x128xf32> to vector<8x7x128xf32>
    %67 = vector.extract_strided_slice %65 {offsets = [0, 0, 0], sizes = [8, 1, 128], strides = [1, 1, 1]} : vector<8x8x128xf32> to vector<8x1x128xf32>
    %68 = tpu.concatenate %66, %67 in 1 : vector<8x7x128xf32>, vector<8x1x128xf32> -> vector<8x8x128xf32>
    %69 = arith.addf %64, %68 : vector<8x8x128xf32>
    %70 = vector.extract_strided_slice %63 {offsets = [0, 0, 256], sizes = [8, 8, 128], strides = [1, 1, 1]} : vector<8x8x640xf32> to vector<8x8x128xf32>
    %71 = vector.extract_strided_slice %70 {offsets = [0, 2, 0], sizes = [8, 6, 128], strides = [1, 1, 1]} : vector<8x8x128xf32> to vector<8x6x128xf32>
    %72 = vector.extract_strided_slice %70 {offsets = [0, 0, 0], sizes = [8, 2, 128], strides = [1, 1, 1]} : vector<8x8x128xf32> to vector<8x2x128xf32>
    %73 = tpu.concatenate %71, %72 in 1 : vector<8x6x128xf32>, vector<8x2x128xf32> -> vector<8x8x128xf32>
    %74 = arith.addf %69, %73 : vector<8x8x128xf32>
    %75 = vector.extract_strided_slice %63 {offsets = [0, 0, 384], sizes = [8, 8, 128], strides = [1, 1, 1]} : vector<8x8x640xf32> to vector<8x8x128xf32>
    %76 = vector.extract_strided_slice %75 {offsets = [0, 3, 0], sizes = [8, 5, 128], strides = [1, 1, 1]} : vector<8x8x128xf32> to vector<8x5x128xf32>
    %77 = vector.extract_strided_slice %75 {offsets = [0, 0, 0], sizes = [8, 3, 128], strides = [1, 1, 1]} : vector<8x8x128xf32> to vector<8x3x128xf32>
    %78 = tpu.concatenate %76, %77 in 1 : vector<8x5x128xf32>, vector<8x3x128xf32> -> vector<8x8x128xf32>
    %79 = arith.addf %74, %78 : vector<8x8x128xf32>
    %80 = vector.extract_strided_slice %63 {offsets = [0, 0, 512], sizes = [8, 8, 128], strides = [1, 1, 1]} : vector<8x8x640xf32> to vector<8x8x128xf32>
    %81 = vector.extract_strided_slice %80 {offsets = [0, 4, 0], sizes = [8, 4, 128], strides = [1, 1, 1]} : vector<8x8x128xf32> to vector<8x4x128xf32>
    %82 = vector.extract_strided_slice %80 {offsets = [0, 0, 0], sizes = [8, 4, 128], strides = [1, 1, 1]} : vector<8x8x128xf32> to vector<8x4x128xf32>
    %83 = tpu.concatenate %81, %82 in 1 : vector<8x4x128xf32>, vector<8x4x128xf32> -> vector<8x8x128xf32>
    %84 = arith.addf %79, %83 : vector<8x8x128xf32>
    %c4_i32 = arith.constant 4 : i32
    %85 = vector.broadcast %c4_i32 : i32 to vector<1x8x1xi32>
    %86 = arith.cmpi slt, %3, %85 : vector<1x8x1xi32>
    %cst_15 = arith.constant 0xFF800000 : f32
    %87 = vector.shape_cast %86 : vector<1x8x1xi1> to vector<1x8x1xi1>
    %88 = vector.broadcast %87 : vector<1x8x1xi1> to vector<8x8x128xi1>
    %89 = vector.broadcast %cst_15 : f32 to vector<8x8x128xf32>
    %90 = arith.select %88, %84, %89 : vector<8x8x128xi1>, vector<8x8x128xf32>
    %cst_16 = arith.constant dense<0xFF800000> : vector<8x128xf32>
    %91 = vector.multi_reduction <maximumf>, %90, %cst_16 [1] : vector<8x8x128xf32> to vector<8x128xf32>
    %c0_17 = arith.constant 0 : index
    %c256 = arith.constant 256 : index
    %92 = vector.load %arg3[%c0_17, %c256] : memref<1x384xf32, #tpu.memory_space<vmem>>, vector<1x128xf32>
    %93 = vector.broadcast %92 : vector<1x128xf32> to vector<8x128xf32>
    %94 = arith.addf %91, %93 : vector<8x128xf32>
    %cst_18 = arith.constant 0.000000e+00 : f32
    %95 = vector.broadcast %cst_18 : f32 to vector<8x128xf32>
    %96 = arith.maximumf %94, %95 : vector<8x128xf32>
    %97 = tpu.concatenate %29, %60, %96 in 1 : vector<8x128xf32>, vector<8x128xf32>, vector<8x128xf32> -> vector<8x384xf32>
    %98 = arith.truncf %97 : vector<8x384xf32> to vector<8x384xbf16>
    %c0_19 = arith.constant 0 : index
    %c0_20 = arith.constant 0 : index
    %99 = vector.load %arg4[%c0_19, %c0_20] : memref<384x128xbf16, #tpu.memory_space<vmem>>, vector<384x128xbf16>
    %cst_21 = arith.constant dense<0.000000e+00> : vector<8x128xf32>
    %100 = tpu.matmul %98, %99, %cst_21 {dimension_numbers = #tpu.dot_dimension_numbers<[1], [0], [0], [1], [0, 0, 1, 1], [], []>} : vector<8x384xbf16>, vector<384x128xbf16>, vector<8x128xf32> -> vector<8x128xf32>
    %c0_22 = arith.constant 0 : index
    %c0_23 = arith.constant 0 : index
    %101 = vector.load %arg5[%c0_22, %c0_23] : memref<1x128xf32, #tpu.memory_space<vmem>>, vector<1x128xf32>
    %102 = vector.broadcast %101 : vector<1x128xf32> to vector<8x128xf32>
    %103 = arith.addf %100, %102 : vector<8x128xf32>
    %c0_24 = arith.constant 0 : index
    %c0_25 = arith.constant 0 : index
    %104 = vector.load %arg6[%c0_24, %c0_25] : memref<8x128xf32, #tpu.memory_space<vmem>>, vector<8x128xf32>
    tpu.vector_store %arg6[%c0_24, %c0_25], %103 {strides = array<i32>} : memref<8x128xf32, #tpu.memory_space<vmem>>, vector<8x128xf32>,
    return
  }
  func.func @transform_0(%arg0: i32) -> (i32, i32, i32) {
    %c0_i32 = arith.constant 0 : i32
    %c0_i32_0 = arith.constant 0 : i32
    %c0_i32_1 = arith.constant 0 : i32
    return %arg0, %c0_i32, %c0_i32_0 : i32, i32, i32
  }
  func.func @transform_1(%arg0: i32) -> (i32, i32) {
    %c0_i32 = arith.constant 0 : i32
    %c0_i32_0 = arith.constant 0 : i32
    %c0_i32_1 = arith.constant 0 : i32
    return %c0_i32, %c0_i32_0 : i32, i32
  }
  func.func @transform_2(%arg0: i32) -> (i32, i32) {
    %c0_i32 = arith.constant 0 : i32
    %c0_i32_0 = arith.constant 0 : i32
    %c0_i32_1 = arith.constant 0 : i32
    return %c0_i32, %c0_i32_0 : i32, i32
  }
  func.func @transform_3(%arg0: i32) -> (i32, i32) {
    %c0_i32 = arith.constant 0 : i32
    %c0_i32_0 = arith.constant 0 : i32
    %c0_i32_1 = arith.constant 0 : i32
    return %c0_i32, %c0_i32_0 : i32, i32
  }
  func.func @transform_4(%arg0: i32) -> (i32, i32) {
    %c0_i32 = arith.constant 0 : i32
    %c0_i32_0 = arith.constant 0 : i32
    %c0_i32_1 = arith.constant 0 : i32
    return %c0_i32, %c0_i32_0 : i32, i32
  }
  func.func @transform_5(%arg0: i32) -> (i32, i32) {
    %c0_i32 = arith.constant 0 : i32
    %c0_i32_0 = arith.constant 0 : i32
    return %arg0, %c0_i32 : i32, i32
  }
}

</mosaic_0001>

<bundles_post_ra>
// kernel: tpu_custom_call.1
= control target key start
LH: loop header
LB: loop body
LE: loop exit
PB: predicated region body
PF: predicated region fallthrough
CT: control target
= control target key end

     0   :  { %6 = vsyncpa [#allocation3], 0  ;;  %s103_s0 = inlined_call_operand.hbm [shape: f32[1,8,128], index: 0, kind: input, shape index: {}]   ;;  %s104_s1 = inlined_call_operand.hbm [shape: f32[1,8,128], index: 1, kind: output, shape index: {}]  }
   0x1   :  { %7 = vsyncpa [#allocation4], 0  ;;  %s85_s6 = smov [#allocation2]  }
   0x2   :  { %s14_s7 = sshll.u32 %s85_s6, 4  ;;  %s15_s7 = int_to_ptr.vmem [resolvable:$true] %s14_s7 }
   0x3   :  { %s49_s8 = scalar_lea.vmem %s15_s7, 128  ;;  %p54_p1 = scmp.lt.s32.totalorder %s15_s7, %s15_s7 }
   0x4   :  { %p50_p0 = scmp.ne.s32.totalorder %s15_s7, %s49_s8  ;;  %p55_p2 = scmp.lt.s32.totalorder %s49_s8, %s49_s8 }
   0x6   :  { %p56_p3 = por %p55_p2, %p54_p1 }
   0x8   :  { %p57_p4 = pnand %p56_p3, %p50_p0 }
   0xa   :  { %60 = shalt.err (!%p57_p4)
}
   0xb   :  { %17 = dma.hbm_to_vmem [thread:$0]  %s103_s0, 128, %s15_s7, [#allocation3]  }
   0xc   :  { %81 = dma.done.wait [#allocation3], 128  }
   0xd   :  { %82 = vsyncadd [#allocation3], 4294967168  ;;  %s86_s11 = smov [#allocation5]   ;;  %v21_v0 = vld [vmem:[#allocation2] sm:$0xff] }
   0xe   :  { %s30_s12 = sshll.u32 %s86_s11, 4  ;;  %v22_v1 = vrot.slane %v21_v0, 7  ;;  %s31_s12 = int_to_ptr.vmem [resolvable:$true] %s30_s12 }
   0xf   :  { %s61_s13 = scalar_lea.vmem %s31_s12, 128  ;;  %p66_p6 = scmp.lt.s32.totalorder %s31_s12, %s31_s12 }
  0x10   :  { %23 = vst [vmem:[#allocation5] sm:$0xff] %v22_v1  ;;  %p62_p5 = scmp.ne.s32.totalorder %s31_s12, %s61_s13  ;;  %p67_p7 = scmp.lt.s32.totalorder %s61_s13, %s61_s13 }
  0x12   :  { %p68_p8 = por %p67_p7, %p66_p6 }
  0x14   :  { %p69_p9 = pnand %p68_p8, %p62_p5 }
  0x16   :  { %72 = shalt.err (!%p69_p9)
}
  0x17   :  { %33 = dma.vmem_to_hbm [thread:$0]  %s31_s12, 128, %s104_s1, [#allocation4]  }
  0x18   :  { %83 = dma.done.wait [#allocation4], 128  }
  0x19   :  { %84 = vsyncadd [#allocation4], 4294967168 }
  0x1a   :  { %37 = vsyncpa [#allocation3], 1 }
  0x1b   :  { %38 = vsyncpa [#allocation4], 1 }

// kernel: tpu_custom_call.1
= control target key start
LH: loop header
LB: loop body
LE: loop exit
PB: predicated region body
PF: predicated region fallthrough
CT: control target
= control target key end

     0   :  { %10 = vsyncpa [#allocation3], 0  ;;  %s3133_s0 = inlined_call_operand.hbm [shape: bf16[16,8,32], index: 0, kind: input, shape index: {}]   ;;  %s3134_s1 = inlined_call_operand.hbm [shape: bf16[32,1536], index: 1, kind: input, shape index: {}]   ;;  %s3135_s2 = inlined_call_operand.vmem [shape: f32[1,384], index: 2, kind: input, shape index: {}]   ;;  %s3136_s3 = inlined_call_operand.hbm [shape: bf16[384,128], index: 3, kind: input, shape index: {}]   ;;  %s3137_s4 = inlined_call_operand.vmem [shape: f32[1,128], index: 4, kind: input, shape index: {}]   ;;  %s3138_s5 = inlined_call_operand.hbm [shape: f32[16,128], index: 5, kind: output, shape index: {}]  }
   0x1   :  { %12 = vsyncpa [#allocation3 + $0x1], 0 }
   0x2   :  { %13 = vsyncpa [#allocation6], 0 }
   0x3   :  { %14 = vsyncpa [#allocation4], 0 }
   0x4   :  { %16 = vsyncpa [#allocation4 + $0x1], 0  ;;  %s2550_s18 = smov 0   ;;  %s2552_s19 = smov 0  }
   0x5   :  { %s2554_s20 = smov 0   ;;  %s2556_s21 = smov 0  }
   0x6 LB: > { %s2571_s22 = sadd.s32 4294967295, %s2507_s21   ;;  %s2028_s23 = sadd.s32 4294967294, %s2507_s21   ;;  %s2507_s21 = sphi %s2556_s21, %s3162_s21   ;;  %s2503_s20 = sphi %s2554_s20, %s3161_s20   ;;  %s2499_s19 = sphi %s2552_s19, %s3160_s19   ;;  %s2495_s18 = sphi %s2550_s18, %s3159_s18  }
   0x7   : > { %p42_p0 = scmp.ne.s32.totalorder %s2499_s19, %s2495_s18  ;;  %p3139_p1 = scmp.eq.s32.totalorder %s2571_s22, 0 }
   0x8   : > { %p156_p3 = scmp.eq.s32.totalorder %s2028_s23, 1  ;;  %p2029_p5 = scmp.ge.s32.totalorder %s2507_s21, 1 }
   0x9   : > { %p2580_p4 = por %p3139_p1, %p42_p0  ;;  %p163_p7 = scmp.lt.s32.totalorder %s2507_s21, 3 }
   0xa   : > { %p2585_p6 = por %p156_p3, %p42_p0  ;;  %s2509_s27 = smov [#allocation5]  }
   0xb   : > { %s3144_s24 = scalar_select %p2580_p4, 1, 0 }
   0xc   : > { %s3145_s25 = scalar_select %p2585_p6, 1, 0 }
   0xd   : > { %p2590_p8 = pnand %p2029_p5, %p163_p7  ;;  %s175_s28 = sshll.u32 %s2509_s27, 4  ;;  %s176_s28 = int_to_ptr.vmem [resolvable:$true] %s175_s28 }
   0xe   : > { %s2510_s30 = smov [#allocation7]   ;;  %s2370_s7 = scalar_lea.vmem %s176_s28, 3072 }
   0xf   : > { %s3146_s26 = scalar_select %p2590_p8, 1, 0 }
  0x10   : > { %p2233_p9 = pneg %p2590_p8  ;;  %s191_s6 = sshll.u32 %s2510_s30, 4  ;;  %s192_s6 = int_to_ptr.vmem [resolvable:$true] %s191_s6 }
  0x11   : > { %p2371_p13 = scmp.ne.s32.totalorder %s176_s28, %s2370_s7  ;;  %p2378_p5 = scmp.lt.s32.totalorder %s176_s28, %s176_s28 }
  0x12   : > { %p2599_p11 = pnand %p2233_p9, %p3139_p1  ;;  %p2379_p7 = scmp.lt.s32.totalorder %s2370_s7, %s2370_s7 }
  0x14   : > { %p2361_p12 = pneg %p2599_p11  ;;  %p2380_p10 = por %p2379_p7, %p2378_p5 }
  0x16   : > { %p2373_p0 = pnand %p2371_p13, %p2361_p12 }
  0x18   : > { %p2374_p3 = pneg %p2373_p0 }
  0x1a   : > { %p2381_p9 = pnand %p2380_p10, %p2374_p3 }
  0x1c   : > { %2384 = shalt.err (!%p2381_p9)
}
  0x1d   : > { %s2511_s8 = smov 768   ;;  %s2512_s9 = smov 48  }
  0x1e   : > { %2236 = dma.hbm_to_vmem [thread:$0]  (!%p2599_p11), %s3134_s1, 3072, %s176_s28, [#allocation6], %s2511_s8, %s2511_s8, %s2512_s9  }
  0x1f   : > { %s2396_s12 = scalar_lea.vmem %s192_s6, 3072  ;;  %p2404_p2 = scmp.lt.s32.totalorder %s192_s6, %s192_s6 }
  0x20   : > { %p2397_p1 = scmp.ne.s32.totalorder %s192_s6, %s2396_s12  ;;  %p2405_p6 = scmp.lt.s32.totalorder %s2396_s12, %s2396_s12 }
  0x22   : > { %p2399_p13 = pnand %p2397_p1, %p2361_p12  ;;  %p2406_p5 = por %p2405_p6, %p2404_p2 }
  0x24   : > { %p2400_p0 = pneg %p2399_p13 }
  0x26   : > { %p2407_p10 = pnand %p2406_p5, %p2400_p0 }
  0x28   : > { %2410 = shalt.err (!%p2407_p10)
}
  0x29   : > { %s3140_s13 = smov 64   ;;  %s2514_s14 = smov 4  }
  0x2a   : > { %2239 = dma.hbm_to_vmem [thread:$0]  (!%p2599_p11), %s3136_s3, 3072, %s192_s6, [#allocation6], %s3140_s13, %s3140_s13, %s2514_s14  }
  0x2b   : > { %s2625_s17 = sadd.s32 1, %s2507_s21   ;;  %s29_s27 = sadd.s32 1, %s2503_s20 }
  0x2c   : > { %s26_s23 = ssub.s32 %s2507_s21, %s2625_s17  ;;  %p36_p2 = scmp.ne.s32.totalorder %s2503_s20, %s2499_s19 }
  0x2d   : > { %p27_p1 = scmp.eq.s32.totalorder %s26_s23, 0  ;;  %p37_p6 = scmp.eq.s32.totalorder %s2507_s21, 0 }
  0x2e   : > { %p3148_p3 = scmp.eq.s32.totalorder %s2571_s22, 1  ;;  %p2250_p9 = scmp.lt.s32.totalorder %s2507_s21, 2 }
  0x2f   : > { %s2634_s28 = scalar_select %p27_p1, %s2503_s20, %s29_s27  }
  0x30   : > { %p38_p12 = por %p37_p6, %p36_p2  ;;  %p2638_p7 = por %p3148_p3, %p36_p2 }
  0x31   : > { %s208_s30 = sand.u32 1, %s2503_s20   ;;  %s2129_s6 = sshll.u32 %s2507_s21, 9 }
  0x32   : > { %s3149_s29 = scalar_select %p2638_p7, 1, 0 }
  0x33   : > { %s2033_s7 = sshll.u32 %s208_s30, 5  ;;  %s2648_s10 = scalar_lea.hbm %s3133_s0, %s2129_s6 }
  0x34   : > { %s212_s11 = scalar_lea.vmem [#allocation2], %s2033_s7  ;;  %p2652_p11 = pnand %p2250_p9, %p38_p12 }
  0x35   : > { %s219_s12 = sshll.u32 %s212_s11, 4  ;;  %s2656_s16 = scalar_lea.sflag [#allocation3], %s208_s30  ;;  %s2650_s12 = int_to_ptr.vmem [resolvable:$true] %s219_s12 }
  0x36   : > { %s2411_s23 = scalar_lea.hbm %s2648_s10, 512  ;;  %p2413_p0 = pneg %p2652_p11 }
  0x37   : > { %p2412_p13 = scmp.ne.s32.totalorder %s2648_s10, %s2411_s23  ;;  %s2416_s7 = scalar_lea.hbm %s3133_s0, 1024 }
  0x38   : > { %p2417_p1 = scmp.lt.s32.totalorder %s2648_s10, %s3133_s0  ;;  %p2418_p2 = scmp.lt.s32.totalorder %s2416_s7, %s2411_s23 }
  0x39   : > { %p2414_p5 = pnand %p2413_p0, %p2412_p13 }
  0x3a   : > { %p2419_p6 = por %p2418_p2, %p2417_p1 }
  0x3b   : > { %p2415_p10 = pneg %p2414_p5 }
  0x3d   : > { %p2420_p12 = pnand %p2419_p6, %p2415_p10 }
  0x3f   : > { %2423 = shalt.err (!%p2420_p12)
}
  0x40   : > { %s2424_s30 = scalar_lea.vmem %s2650_s12, 512  ;;  %s2515_s11 = smov [#allocation2]  }
  0x41   : > { %p2425_p3 = scmp.ne.s32.totalorder %s2650_s12, %s2424_s30  ;;  %s2429_s13 = sshll.u32 %s2515_s11, 4  ;;  %s2430_s13 = int_to_ptr.vmem [resolvable:$false] %s2429_s13 }
  0x42   : > { %s2431_s27 = scalar_lea.vmem %s2430_s13, 1024  ;;  %p2432_p5 = scmp.lt.s32.totalorder %s2650_s12, %s2430_s13 }
  0x43   : > { %p2427_p9 = pnand %p2425_p3, %p2413_p0  ;;  %p2433_p7 = scmp.lt.s32.totalorder %s2431_s27, %s2424_s30 }
  0x45   : > { %p2428_p13 = pneg %p2427_p9  ;;  %p2434_p4 = por %p2433_p7, %p2432_p5 }
  0x47   : > { %p2435_p8 = pnand %p2434_p4, %p2428_p13 }
  0x49   : > { %2438 = shalt.err (!%p2435_p8)
}
  0x4a   : > { %s3151_s23 = smov 64   ;;  %p3152_p0 = scmp.ne.s32.totalorder %s3146_s26, 0 }
  0x4b   : > { %2243 = dma.hbm_to_vmem [thread:$0]  (!%p2652_p11), %s2648_s10, 512, %s2650_s12, %s2656_s16, %s3151_s23, %s3151_s23, %s2514_s14  }
  0x4c   : > { %231 = sbr.rel (%p3152_p0) target bundleno = 632 (0x278), region = 40  ;;  %s2683_s6 = sand.u32 (!%p3152_p0), 1, %s2499_s19  }
  0x4d   : > { %s2037_s13 = sshll.u32 (!%p3152_p0), %s2683_s6, 5  ;;  %s234_s7 = scalar_lea.sflag (!%p3152_p0), [#allocation3], %s2683_s6 }
  0x4e   : > { %s2687_s8 = scalar_lea.vmem (!%p3152_p0), [#allocation2], %s2037_s13  ;;  %p3153_p4 = scmp.ne.s32.totalorder (!%p3152_p0), %s3144_s24, 0 }
  0x51   : > { %2482 = dma.done.wait (%p3153_p4), %s234_s7, 512  }
  0x52   : > { %2484 = vsyncadd (%p3153_p4), %s234_s7, 4294966784  ;;  %p3154_p8 = scmp.eq.s32.totalorder %s2571_s22, 0 }
  0x54   : > { %2486 = dma.done.wait (%p3154_p8), [#allocation6], 6144   ;;  %p3155_p7 = pmov %p3154_p8 }
  0x55   : > { %v2516_v0 = vmov 0   ;;  %v2295_v1 = vld [vmem:[#allocation5 + $0x64] ss:$48 sps:$4 sm:$0xff]   ;;  %v2297_v2 = vld [vmem:[#allocation5 + $0x60] ss:$48 sps:$4 sm:$0xff]   ;;  %vm360_vm0 = vcmask 261120  }
  0x56   : > { %2488 = vsyncadd (%p3155_p7), [#allocation6], 4294961152  ;;  %405 = vmatprep.mubr.bf16.mxu0 %v2516_v0  ;;  %385 = vmatprep.subr.bf16.mxu0 %v2295_v1  ;;  %v2298_v3 = vld [vmem:[#allocation5 + $0x68] ss:$48 sps:$4 sm:$0xff]   ;;  %v2300_v4 = vld [vmem:[#allocation5 + $0x4] ss:$48 sps:$4 sm:$0xff]  }
  0x57   : > { %386 = vmatpush1.bf16.msra.mxu0 %v2297_v2  ;;  %v2302_v5 = vld [vmem:[#allocation5] ss:$48 sps:$4 sm:$0xff]   ;;  %2217 = vmatprep.subr.bf16.mxu1 %v2298_v3  ;;  %v2303_v6 = vld [vmem:[#allocation5 + $0x8] ss:$48 sps:$4 sm:$0xff]   ;;  %v2311_v11 = vld [vmem:[#allocation5 + $0x6c] ss:$48 sps:$4 sm:$0xff]  }
  0x58   : > { %2219 = vmatpush3.bf16.msra.mxu1 %v2298_v3  ;;  %387 = vmatprep.subr.bf16.mxu0 %v2300_v4  ;;  %v2699_v7 = vld [vmem:[%s2687_s8] sm:$0xff]   ;;  %v2702_v8 = vld [vmem:[%s2687_s8 + $0x10] sm:$0xff]   ;;  %v2707_v9 = vld [vmem:[%s2687_s8 + $0x18] sm:$0xff]   ;;  %v2517_v61 = vmov 0.0   ;;  %vm2518_vm1 = vmmov 0   ;;  %vm1575_vm4 = vcmask 1041409  }
  0x59   : > { %2218 = vmatprep.subr.bf16.mxu1 %v2303_v6  ;;  %2181 = vmatprep.mubr.msk.bf16.mxu1 %vm360_vm0, %v2702_v8  ;;  %v2308_v10 = vld [vmem:[#allocation5 + $0x70] ss:$48 sps:$4 sm:$0xff]   ;;  %v2315_v13 = vld [vmem:[#allocation5 + $0xc] ss:$48 sps:$4 sm:$0xff]   ;;  %v2322_v16 = vld [vmem:[#allocation5 + $0x78] ss:$48 sps:$4 sm:$0xff]  }
  0x5a   : > { %v2312_v12 = vld [vmem:[#allocation5 + $0x10] ss:$48 sps:$4 sm:$0xff]   ;;  %v2715_v14 = vld [vmem:[%s2687_s8 + $0x8] sm:$0xff]   ;;  %v2310_v21 = vld [vmem:[#allocation5 + $0x74] ss:$48 sps:$4 sm:$0xff]   ;;  %vm1578_vm6 = vcmask 1042434  }
  0x5b   : > { %388 = vmatpush1.bf16.msra.mxu0 %v2302_v5  ;;  %v2317_v15 = vld [vmem:[#allocation5 + $0x80] ss:$48 sps:$4 sm:$0xff]   ;;  %v2320_v17 = vld [vmem:[#allocation5 + $0x7c] ss:$48 sps:$4 sm:$0xff]   ;;  %v2323_v22 = vld [vmem:[#allocation5 + $0x18] ss:$48 sps:$4 sm:$0xff]  }
  0x5c   : > { %2173 = vmatprep.subr.bf16.mxu0 %v2298_v3  ;;  %2220 = vmatpush3.bf16.msra.mxu1 %v2303_v6  ;;  %v2326_v18 = vld [vmem:[#allocation5 + $0x20] ss:$48 sps:$4 sm:$0xff]   ;;  %v2325_v19 = vld [vmem:[#allocation5 + $0x1c] ss:$48 sps:$4 sm:$0xff]   ;;  %v2314_v23 = vld [vmem:[#allocation5 + $0x14] ss:$48 sps:$4 sm:$0xff]  }
  0x5d   : > { %727 = vmatprep.subr.bf16.mxu1 %v2308_v10  ;;  %v2333_v20 = vld [vmem:[#allocation5 + $0x8c] ss:$48 sps:$4 sm:$0xff]   ;;  %v2329_v24 = vld [vmem:[#allocation5 + $0x88] ss:$48 sps:$4 sm:$0xff]   ;;  %v2319_v25 = vld [vmem:[#allocation5 + $0x84] ss:$48 sps:$4 sm:$0xff]  }
  0x5e   : > { %2051 = vmatmul.mubr.msk.bf16.vlgmr.msra.gmra.mxu0 %vm360_vm0, %v2699_v7  ;;  %v2331_v26 = vld [vmem:[#allocation5 + $0x28] ss:$48 sps:$4 sm:$0xff]   ;;  %v2334_v27 = vld [vmem:[#allocation5 + $0x2c] ss:$48 sps:$4 sm:$0xff]   ;;  %v2328_v28 = vld [vmem:[#allocation5 + $0x24] ss:$48 sps:$4 sm:$0xff]  }
  0x5f   : > { %2174 = vmatpush3.bf16.msra.mxu0 %v2298_v3  ;;  %415 = vmatprep.mubr.bf16.mxu0 %v2516_v0  ;;  %v2335_v29 = vld [vmem:[#allocation7 + $0x78] sm:$0xff]   ;;  %v2337_v31 = vld [vmem:[#allocation7 + $0x70] sm:$0xff]   ;;  %v2339_v33 = vld [vmem:[#allocation7 + $0x68] sm:$0xff]   ;;  %v306_v3 = vlaneseq  ;;  %vm1581_vm7 = vcmask 1043459   ;;  %vm1584_vm8 = vcmask 1044484   ;;  %vm1587_vm9 = vcmask 1045509  }
  0x60   : > { %2182 = vmatmul.mubr.msk.bf16.vlgmr.msra.gmra.mxu1 %vm360_vm0, %v2707_v9  ;;  %2175 = vmatprep.subr.bf16.mxu0 %v2303_v6  ;;  %v2336_v30 = vld [vmem:[#allocation7 + $0x38] sm:$0xff]   ;;  %v2338_v32 = vld [vmem:[#allocation7 + $0x30] sm:$0xff]   ;;  %v2340_v34 = vld [vmem:[#allocation7 + $0x28] sm:$0xff]   ;;  %vm1590_vm10 = vcmask 1046534   ;;  %vm1593_vm11 = vcmask 1047559   ;;  %s2040_s16 = sshll.u32 %s2683_s6, 3 }
  0x61   : > { %728 = vmatpush1.bf16.msra.mxu1 %v2311_v11  ;;  %747 = vmatprep.mubr.bf16.mxu1 %v2516_v0  ;;  %v2341_v35 = vld [vmem:[#allocation7 + $0x60] sm:$0xff]   ;;  %v2343_v37 = vld [vmem:[#allocation7 + $0x58] sm:$0xff]   ;;  %v2345_v39 = vld [vmem:[#allocation7 + $0x50] sm:$0xff]   ;;  %s2126_s11 = sshll.u32 %s2571_s22, 7  ;;  %s271_s27 = scalar_lea.vmem [#allocation8], %s2040_s16 }
  0x62   : > { %729 = vmatprep.subr.bf16.mxu1 %v2312_v12  ;;  %v2342_v36 = vld [vmem:[#allocation7 + $0x20] sm:$0xff]   ;;  %v2344_v38 = vld [vmem:[#allocation7 + $0x18] sm:$0xff]   ;;  %v2346_v40 = vld [vmem:[#allocation7 + $0x10] sm:$0xff]   ;;  %s1939_s23 = sshll.u32 %s271_s27, 4  ;;  %s3090_s8 = scalar_lea.hbm %s3138_s5, %s2126_s11  ;;  %s3092_s23 = int_to_ptr.vmem [resolvable:$true] %s1939_s23 }
  0x63   : > { %2176 = vmatpush3.bf16.msra.mxu0 %v2303_v6  ;;  %v2347_v41 = vld [vmem:[#allocation7 + $0x48] sm:$0xff]   ;;  %v2349_v43 = vld [vmem:[#allocation7 + $0x40] sm:$0xff]   ;;  %v2351_v58 = vld [vmem:[#allocation7 + $0xb8] sm:$0xff]   ;;  %s1926_s24 = scalar_lea.sflag [#allocation4], %s2683_s6  ;;  %s2439_s22 = scalar_lea.vmem %s3092_s23, 128 }
  0x64   : > { %800 = vmatprep.subr.bf16.mxu0 %v2322_v16  ;;  %v2348_v42 = vld [vmem:[#allocation7 + $0x8] sm:$0xff]   ;;  %v2350_v44 = vld [vmem:[#allocation7] sm:$0xff]   ;;  %v2352_v62 = vld [vmem:[#allocation7 + $0xb0] sm:$0xff]   ;;  %p2440_p11 = scmp.ne.s32.totalorder %s3092_s23, %s2439_s22  ;;  %p3156_p10 = scmp.ne.s32.totalorder %s3149_s29, 0 }
  0x65   : > { %730 = vmatpush1.bf16.msra.mxu1 %v2315_v13  ;;  %v2353_v4 = vld [vmem:[#allocation7 + $0xa8] sm:$0xff]   ;;  %v2354_v11 = vld [vmem:[#allocation7 + $0xa0] sm:$0xff]   ;;  %s2519_s26 = smov [#allocation8]  }
  0x66   : > { %2052 = vmatmul.mubr.msk.bf16.gmra.mxu0 %vm360_vm0, %v2715_v14  ;;  %1124 = vmatprep.subr.bf16.mxu1 %v2317_v15  ;;  %p2441_p1 = pnand %p2440_p11, %p3156_p10  ;;  %s2443_s14 = sshll.u32 %s2519_s26, 4  ;;  %s2444_s14 = int_to_ptr.vmem [resolvable:$false] %s2443_s14 }
  0x67   : > { %425 = vmatprep.mubr.bf16.mxu0 %v2516_v0  ;;  %s2445_s10 = scalar_lea.vmem %s2444_s14, 256  ;;  %p2446_p6 = scmp.lt.s32.totalorder %s3092_s23, %s2444_s14 }
  0x68   : > { %2068 = vmatmul.mubr.msk.bf16.vlgmr.msra.gmra.mxu1 %vm360_vm0, %v2699_v7  ;;  %p2442_p2 = pneg %p2441_p1  ;;  %p2447_p12 = scmp.lt.s32.totalorder %s2445_s10, %s2439_s22 }
  0x69   : > { %757 = vmatprep.mubr.bf16.mxu1 %v2516_v0  ;;  %1125 = vmatpush1.bf16.msra.mxu1 %v2320_v17 }
  0x6a   : > { %1126 = vmatprep.subr.bf16.mxu1 %v2326_v18  ;;  %p2448_p3 = por %p2447_p12, %p2446_p6 }
  0x6c   : > { %p2449_p9 = pnand %p2448_p3, %p2442_p2 }
  0x6d   : > { %1127 = vmatpush1.bf16.msra.mxu1 %v2325_v19 }
  0x6e   : > { %2053 = vmatmul.mubr.msk.bf16.gmra.mxu0 %vm360_vm0, %v2702_v8  ;;  %2185 = vmatprep.subr.bf16.mxu1 %v2333_v20 }
  0x6f   : > { %435 = vmatprep.mubr.bf16.mxu0 %v2516_v0 }
  0x70   : > { %2069 = vmatmul.mubr.msk.bf16.gmra.mxu1 %vm360_vm0, %v2715_v14 }
  0x71   : > { %767 = vmatprep.mubr.bf16.mxu1 %v2516_v0 }
  0x76   : > { %2054 = vmatmul.mubr.msk.bf16.gmra.mxu0 %vm360_vm0, %v2707_v9 }
  0x77   : > { %2177 = vmatprep.mubr.msk.bf16.mxu0 %vm360_vm0, %v2699_v7 }
  0x78   : > { %2070 = vmatmul.mubr.msk.bf16.gmra.mxu1 %vm360_vm0, %v2702_v8 }
  0x79   : > { %777 = vmatprep.mubr.bf16.mxu1 %v2516_v0 }
  0x7e   : > { %2178 = vmatmul.mubr.msk.bf16.vlgmr.msra.gmra.mxu0 %vm360_vm0, %v2715_v14 }
  0x7f   : > { %801 = vmatpush1.bf16.msra.mxu0 %v2310_v21  ;;  %820 = vmatprep.mubr.bf16.mxu0 %v2516_v0 }
  0x80   : > { %2071 = vmatmul.mubr.msk.bf16.gmra.mxu1 %vm360_vm0, %v2707_v9  ;;  %802 = vmatprep.subr.bf16.mxu0 %v2323_v22 }
  0x81   : > { %1144 = vmatprep.mubr.bf16.mxu1 %v2516_v0 }
  0x83   : > { %803 = vmatpush1.bf16.msra.mxu0 %v2314_v23 }
  0x84   : > { %1197 = vmatprep.subr.bf16.mxu0 %v2329_v24 }
  0x86   : > { %2072 = vmatmul.mubr.msk.bf16.vlgmr.msra.gmra.mxu0 %vm360_vm0, %v2699_v7 }
  0x87   : > { %1198 = vmatpush1.bf16.msra.mxu0 %v2319_v25  ;;  %830 = vmatprep.mubr.bf16.mxu0 %v2516_v0 }
  0x88   : > { %2087 = vmatmul.mubr.msk.bf16.vlgmr.msra.gmra.mxu1 %vm360_vm0, %v2699_v7  ;;  %1199 = vmatprep.subr.bf16.mxu0 %v2331_v26 }
  0x89   : > { %1154 = vmatprep.mubr.bf16.mxu1 %v2516_v0  ;;  %2186 = vmatpush3.bf16.msra.mxu1 %v2333_v20  ;;  %v2355_v20 = vld [vmem:[#allocation7 + $0x98] sm:$0xff]  }
  0x8a   : > { %2187 = vmatprep.subr.bf16.mxu1 %v2334_v27 }
  0x8b   : > { %1200 = vmatpush1.bf16.msra.mxu0 %v2328_v28 }
  0x8c   : > { %2142 = vmatprep.subr.bf16.mxu0 %v2335_v29 }
  0x8d   : > { %2188 = vmatpush3.bf16.msra.mxu1 %v2334_v27 }
  0x8e   : > { %2073 = vmatmul.mubr.msk.bf16.gmra.mxu0 %vm360_vm0, %v2715_v14  ;;  %2197 = vmatprep.subr.bf16.mxu1 %v2517_v61 }
  0x8f   : > { %840 = vmatprep.mubr.bf16.mxu0 %v2516_v0 }
  0x90   : > { %2088 = vmatmul.mubr.msk.bf16.gmra.mxu1 %vm360_vm0, %v2715_v14 }
  0x91   : > { %1164 = vmatprep.mubr.bf16.mxu1 %v2516_v0 }
  0x96   : > { %2074 = vmatmul.mubr.msk.bf16.gmra.mxu0 %vm360_vm0, %v2702_v8 }
  0x97   : > { %850 = vmatprep.mubr.bf16.mxu0 %v2516_v0 }
  0x98   : > { %2089 = vmatmul.mubr.msk.bf16.gmra.mxu1 %vm360_vm0, %v2702_v8 }
  0x99   : > { %1174 = vmatprep.mubr.bf16.mxu1 %v2516_v0 }
  0x9e   : > { %2075 = vmatmul.mubr.msk.bf16.gmra.mxu0 %vm360_vm0, %v2707_v9 }
  0x9f   : > { %1217 = vmatprep.mubr.bf16.mxu0 %v2516_v0 }
  0xa0   : > { %2090 = vmatmul.mubr.msk.bf16.gmra.mxu1 %vm360_vm0, %v2707_v9 }
  0xa1   : > { %2189 = vmatprep.mubr.msk.bf16.mxu1 %vm360_vm0, %v2699_v7 }
  0xa6   : > { %2091 = vmatmul.mubr.msk.bf16.vlgmr.msra.gmra.mxu0 %vm360_vm0, %v2699_v7  ;;  %v2813_v7 = vshrl.u32 %v306_v3, 7 }
  0xa7   : > { %1227 = vmatprep.mubr.bf16.mxu0 %v2516_v0  ;;  %2143 = vmatpush3.bf16.msra.mxu0 %v2336_v30 }
  0xa8   : > { %2190 = vmatmul.mubr.msk.bf16.vlgmr.msra.gmra.mxu1 %vm360_vm0, %v2715_v14  ;;  %2144 = vmatprep.subr.bf16.mxu0 %v2337_v31  ;;  %vm593_vm2 = vcmp.lt.s32.totalorder %v2813_v7, 6  ;;  %v2356_v31 = vld [vmem:[#allocation7 + $0x90] sm:$0xff]   ;;  %vm982_vm3 = vcmp.lt.s32.totalorder %v2813_v7, 5  ;;  %vm1484_vm5 = vcmp.lt.s32.totalorder %v2813_v7, 4 }
  0xa9   : > { %2193 = vmatprep.mubr.msk.bf16.mxu1 %vm360_vm0, %v2702_v8  ;;  %2198 = vmatpush3.bf16.msra.mxu1 %v2351_v58  ;;  %v2358_v58 = vld [vmem:[#allocation7 + $0x80] sm:$0xff]  }
  0xaa   : > { %2199 = vmatprep.subr.bf16.mxu1 %v2517_v61 }
  0xab   : > { %2145 = vmatpush3.bf16.msra.mxu0 %v2338_v32 }
  0xac   : > { %2146 = vmatprep.subr.bf16.mxu0 %v2339_v33 }
  0xad   : > { %2200 = vmatpush3.bf16.msra.mxu1 %v2352_v62 }
  0xae   : > { %2092 = vmatmul.mubr.msk.bf16.gmra.mxu0 %vm360_vm0, %v2715_v14  ;;  %2201 = vmatprep.subr.bf16.mxu1 %v2517_v61 }
  0xaf   : > { %1237 = vmatprep.mubr.bf16.mxu0 %v2516_v0  ;;  %2147 = vmatpush3.bf16.msra.mxu0 %v2340_v34 }
  0xb0   : > { %2194 = vmatmul.mubr.msk.bf16.gmra.mxu1 %vm360_vm0, %v2707_v9  ;;  %2148 = vmatprep.subr.bf16.mxu0 %v2341_v35 }
  0xb1   : > { %2213 = vmatprep.mubr.msk.bf16.mxu1 %vm2518_vm1, %v2517_v61  ;;  %2202 = vmatpush3.bf16.msra.mxu1 %v2353_v4 }
  0xb2   : > { %2203 = vmatprep.subr.bf16.mxu1 %v2517_v61 }
  0xb3   : > { %2149 = vmatpush3.bf16.msra.mxu0 %v2342_v36 }
  0xb4   : > { %2150 = vmatprep.subr.bf16.mxu0 %v2343_v37 }
  0xb5   : > { %2204 = vmatpush3.bf16.msra.mxu1 %v2354_v11 }
  0xb6   : > { %2093 = vmatmul.mubr.msk.bf16.gmra.mxu0 %vm360_vm0, %v2702_v8  ;;  %2205 = vmatprep.subr.bf16.mxu1 %v2517_v61 }
  0xb7   : > { %1247 = vmatprep.mubr.bf16.mxu0 %v2516_v0  ;;  %2151 = vmatpush3.bf16.msra.mxu0 %v2344_v38 }
  0xb8   : > { %2152 = vmatprep.subr.bf16.mxu0 %v2345_v39 }
  0xb9   : > { %2206 = vmatpush3.bf16.msra.mxu1 %v2355_v20 }
  0xba   : > { %2207 = vmatprep.subr.bf16.mxu1 %v2517_v61 }
  0xbb   : > { %2153 = vmatpush3.bf16.msra.mxu0 %v2346_v40 }
  0xbc   : > { %2154 = vmatprep.subr.bf16.mxu0 %v2347_v41  ;;  %v2357_v41 = vld [vmem:[#allocation7 + $0x88] sm:$0xff]  }
  0xbd   : > { %2208 = vmatpush3.bf16.msra.mxu1 %v2356_v31 }
  0xbe   : > { %2094 = vmatmul.mubr.msk.bf16.gmra.mxu0 %vm360_vm0, %v2707_v9  ;;  %2209 = vmatprep.subr.bf16.mxu1 %v2517_v61 }
  0xbf   : > { %2155 = vmatpush3.bf16.msra.mxu0 %v2348_v42 }
  0xc0   : > { %2156 = vmatprep.subr.bf16.mxu0 %v2349_v43 }
  0xc1   : > { %2210 = vmatpush3.bf16.msra.mxu1 %v2357_v41 }
  0xc2   : > { %2211 = vmatprep.subr.bf16.mxu1 %v2517_v61 }
  0xc3   : > { %2157 = vmatpush3.bf16.msra.mxu0 %v2350_v44 }
  0xc5   : > { %2212 = vmatpush3.bf16.msra.mxu1 %v2358_v58 }
 0x11e   : > { %v407_v45 = vpop.f32.mrf.mxu0 }
 0x120   : > { %v409_v46 = vpop.f32.mrf.mxu0  ;;  %v2785_v47 = vpop.f32.mrf.mxu1 }
 0x121   : > { %v519_v48 = vrot.slane %v409_v46, 1  ;;  %v566_v36 = vrot.slane %v2785_v47, 2 }
 0x122   : > { %v411_v49 = vpop.f32.mrf.mxu0  ;;  %v496_v50 = vpop.f32.mrf.mxu1 }
 0x123   : > { %v2787_v51 = vadd.f32 %v519_v48, %v407_v45  ;;  %v564_v14 = vrot.slane %v496_v50, 2 }
 0x124   : > { %v413_v52 = vpop.f32.mrf.mxu0  ;;  %v2789_v53 = vpop.f32.mrf.mxu1 }
 0x125   : > { %v520_v54 = vrot.slane %v413_v52, 1  ;;  %v567_v61 = vrot.slane %v2789_v53, 2 }
 0x126   : > { %v2791_v55 = vpop.f32.mrf.mxu0  ;;  %v499_v56 = vpop.f32.mrf.mxu1 }
 0x127   : > { %v2793_v57 = vadd.f32 %v520_v54, %v411_v49  ;;  %v565_v23 = vrot.slane %v499_v56, 2 }
 0x128   : > { %v2795_v59 = vpop.f32.mrf.mxu0  ;;  %v2797_v60 = vpop.f32.mrf.mxu1 }
 0x129   : > { %v521_v42 = vrot.slane %v2795_v59, 1 }
 0x12a   : > { %v2800_v63 = vpop.f32.mrf.mxu0  ;;  %v2802_v0 = vpop.f32.mrf.mxu1 }
 0x12b   : > { %v546_v59 = vadd.f32 %v521_v42, %v2791_v55 }
 0x12c   : > { %v2806_v1 = vpop.f32.mrf.mxu0  ;;  %v2808_v2 = vpop.f32.mrf.mxu1 }
 0x12d   : > { %v522_v46 = vrot.slane %v2806_v1, 1 }
 0x12e   : > { %v427_v5 = vpop.f32.mrf.mxu0  ;;  %v2810_v6 = vpop.f32.mrf.mxu1 }
 0x12f   : > { %v547_v1 = vadd.f32 %v522_v46, %v2800_v63  ;;  %v869_v63 = vrot.slane %v2802_v0, 1  ;;  %v870_v20 = vrot.slane %v2810_v6, 1 }
 0x130   : > { %v429_v8 = vpop.f32.mrf.mxu0  ;;  %v2815_v9 = vpop.f32.mrf.mxu1 }
 0x131   : > { %v523_v10 = vrot.slane %v429_v8, 1 }
 0x132   : > { %v431_v12 = vpop.f32.mrf.mxu0  ;;  %v2817_v13 = vpop.f32.mrf.mxu1 }
 0x133   : > { %v548_v15 = vadd.f32 %v523_v10, %v427_v5 }
 0x134   : > { %v433_v16 = vpop.f32.mrf.mxu0  ;;  %v2821_v17 = vpop.f32.mrf.mxu1 }
 0x135   : > { %v589_v18 = vadd.f32 %v564_v14, %v548_v15  ;;  %v524_v19 = vrot.slane %v433_v16, 1 }
 0x136   : > { %v437_v21 = vpop.f32.mrf.mxu0  ;;  %v2823_v22 = vpop.f32.mrf.mxu1 }
 0x137   : > { %v600_v24 = vsel %vm593_vm2, %v589_v18, -inf  ;;  %v549_v25 = vadd.f32 %v524_v19, %v431_v12 }
 0x138   : > { %v628_v26 = vrot.slane %v600_v24, 4  ;;  %v439_v27 = vpop.f32.mrf.mxu0  ;;  %v2828_v28 = vpop.f32.mrf.mxu1 }
 0x139   : > { %v590_v29 = vadd.f32 %v565_v23, %v549_v25  ;;  %v525_v30 = vrot.slane %v439_v27, 1 }
 0x13a   : > { %v441_v32 = vpop.f32.mrf.mxu0  ;;  %v2830_v33 = vpop.f32.mrf.mxu1  ;;  %v629_v37 = vmax.f32 %v600_v24, %v628_v26  ;;  %v871_v26 = vrot.slane %v2817_v13, 1 }
 0x13b   : > { %v601_v34 = vsel %vm593_vm2, %v590_v29, -inf  ;;  %v550_v35 = vadd.f32 %v525_v30, %v437_v21 }
 0x13c   : > { %v634_v38 = vrot.slane %v601_v34, 4  ;;  %v443_v39 = vpop.f32.mrf.mxu0  ;;  %v2836_v40 = vpop.f32.mrf.mxu1  ;;  %v630_v49 = vrot.slane %v629_v37, 2 }
 0x13d   : > { %v591_v43 = vadd.f32 %v566_v36, %v550_v35  ;;  %v526_v47 = vrot.slane %v443_v39, 1  ;;  %v894_v35 = vadd.f32 %v870_v20, %v2808_v2  ;;  %v872_v36 = vrot.slane %v2823_v22, 1 }
 0x13e   : > { %v2179_v44 = vpop.f32.mrf.mxu0  ;;  %v2839_v45 = vpop.f32.mrf.mxu1  ;;  %v635_v48 = vmax.f32 %v601_v34, %v634_v38  ;;  %v631_v11 = vmax.f32 %v629_v37, %v630_v49  ;;  %v893_v34 = vadd.f32 %v869_v63, %v2797_v60 }
 0x13f   : > { %v562_v50 = vrot.slane %v2179_v44, 2  ;;  %v602_v62 = vsel %vm593_vm2, %v591_v43, -inf  ;;  %v551_v12 = vadd.f32 %v526_v47, %v441_v32  ;;  %v895_v43 = vadd.f32 %v871_v26, %v2815_v9 }
 0x140   : > { %v480_v52 = vpop.f32.mrf.mxu0  ;;  %v2843_v54 = vpop.f32.mrf.mxu1  ;;  %v636_v5 = vrot.slane %v635_v48, 2  ;;  %v640_v55 = vrot.slane %v602_v62, 4  ;;  %v632_v25 = vrot.slane %v631_v11, 1  ;;  %v873_v44 = vrot.slane %v2830_v33, 1 }
 0x141   : > { %v560_v56 = vrot.slane %v480_v52, 2  ;;  %v587_v14 = vadd.f32 %v562_v50, %v546_v59  ;;  %v592_v27 = vadd.f32 %v567_v61, %v551_v12  ;;  %v874_v47 = vrot.slane %v2839_v45, 1 }
 0x142   : > { %v2180_v3 = vpop.f32.mrf.mxu0  ;;  %v2848_v4 = vpop.f32.mrf.mxu1  ;;  %v637_v23 = vmax.f32 %v635_v48, %v636_v5  ;;  %v641_v53 = vmax.f32 %v602_v62, %v640_v55  ;;  %v633_v48 = vmax.f32 %v631_v11, %v632_v25  ;;  %v2891_v9 = vadd.f32 %v872_v36, %v2821_v17 }
 0x143   : > { %v585_v8 = vadd.f32 %v560_v56, %v2787_v51  ;;  %v563_v10 = vrot.slane %v2180_v3, 2  ;;  %v598_v29 = vsel %vm593_vm2, %v587_v14, -inf  ;;  %v603_v60 = vsel %vm593_vm2, %v592_v27, -inf }
 0x144   : > { %v483_v15 = vpop.f32.mrf.mxu0  ;;  %v2853_v16 = vpop.f32.mrf.mxu1  ;;  %v638_v38 = vrot.slane %v637_v23, 1  ;;  %v616_v39 = vrot.slane %v598_v29, 4  ;;  %v642_v49 = vrot.slane %v641_v53, 2  ;;  %v646_v3 = vrot.slane %v603_v60, 4 }
 0x145   : > { %v596_v18 = vsel %vm593_vm2, %v585_v8, -inf  ;;  %v588_v19 = vadd.f32 %v563_v10, %v547_v1  ;;  %v561_v6 = vrot.slane %v483_v15, 2  ;;  %v2896_v5 = vadd.f32 %v873_v44, %v2828_v28 }
 0x146   : > { %v2860_v51 = vpop.f32.mrf.mxu1  ;;  %v822_v21 = vpop.f32.mrf.mxu0  ;;  %v604_v24 = vrot.slane %v596_v18, 4  ;;  %v639_v62 = vmax.f32 %v637_v23, %v638_v38  ;;  %v617_v45 = vmax.f32 %v598_v29, %v616_v39  ;;  %v643_v15 = vmax.f32 %v641_v53, %v642_v49 }
 0x147   : > { %v599_v0 = vsel %vm593_vm2, %v588_v19, -inf  ;;  %v586_v42 = vadd.f32 %v561_v6, %v2793_v57  ;;  %v2888_v57 = vld [vmem:[%s3135_s2] ss:$0 sm:$0xff]  ;;  %v909_v56 = vrot.slane %v822_v21, 2  ;;  %v2904_v55 = vadd.f32 %v874_v47, %v2836_v40 }
 0x148   : > { %v824_v30 = vpop.f32.mrf.mxu0  ;;  %v2865_v31 = vpop.f32.mrf.mxu1  ;;  %v605_v32 = vmax.f32 %v596_v18, %v604_v24  ;;  %v622_v2 = vrot.slane %v599_v0, 4  ;;  %v2901_v17 = vadd.f32 %v2888_v57, %v633_v48  ;;  %v2909_v23 = vadd.f32 %v2888_v57, %v639_v62 }
 0x149   : > { %v597_v50 = vsel %vm593_vm2, %v586_v42, -inf  ;;  %v949_v1 = vrot.slane %v824_v30, 3  ;;  %v933_v11 = vadd.f32 %v909_v56, %v893_v34  ;;  %v647_v24 = vmax.f32 %v603_v60, %v646_v3 }
 0x14a   : > { %v826_v13 = vpop.f32.mrf.mxu0  ;;  %v2873_v37 = vpop.f32.mrf.mxu1  ;;  %v606_v41 = vrot.slane %v605_v32, 2  ;;  %v610_v52 = vrot.slane %v597_v50, 4  ;;  %v623_v8 = vmax.f32 %v599_v0, %v622_v2  ;;  %v618_v25 = vrot.slane %v617_v45, 2 }
 0x14b   : > { %v910_v18 = vrot.slane %v826_v13, 2  ;;  %v974_v63 = vadd.f32 %v949_v1, %v933_v11  ;;  %v671_v0 = vmax.f32 %v2901_v17, 0.0  ;;  %v644_v6 = vrot.slane %v643_v15, 1 }
 0x14c   : > { %v828_v46 = vpop.f32.mrf.mxu0  ;;  %v2880_v22 = vpop.f32.mrf.mxu1  ;;  %v607_v33 = vmax.f32 %v605_v32, %v606_v41  ;;  %v611_v10 = vmax.f32 %v597_v50, %v610_v52  ;;  %v624_v27 = vrot.slane %v623_v8, 2  ;;  %v875_v34 = vrot.slane %v2848_v4, 1 }
 0x14d   : > { %v950_v20 = vrot.slane %v828_v46, 3  ;;  %v934_v26 = vadd.f32 %v910_v18, %v894_v35  ;;  %v985_v40 = vsel %vm982_vm3, %v974_v63, -inf  ;;  %v648_v44 = vrot.slane %v647_v24, 2 }
 0x14e   : > { %v832_v58 = vpop.f32.mrf.mxu0  ;;  %v2893_v59 = vpop.f32.mrf.mxu1  ;;  %v608_v19 = vrot.slane %v607_v33, 1  ;;  %v612_v61 = vrot.slane %v611_v10, 2  ;;  %v993_v36 = vrot.slane %v985_v40, 4  ;;  %v619_v60 = vmax.f32 %v617_v45, %v618_v25 }
 0x14f   : > { %v911_v30 = vrot.slane %v832_v58, 2  ;;  %v975_v39 = vadd.f32 %v950_v20, %v934_v26  ;;  %v672_v48 = vmax.f32 %v2909_v23, 0.0  ;;  %v625_v49 = vmax.f32 %v623_v8, %v624_v27 }
 0x150   : > { %v834_v12 = vpop.f32.mrf.mxu0  ;;  %v2898_v14 = vpop.f32.mrf.mxu1  ;;  %v613_v29 = vmax.f32 %v611_v10, %v612_v61  ;;  %v609_v13 = vmax.f32 %v607_v33, %v608_v19  ;;  %v645_v33 = vmax.f32 %v643_v15, %v644_v6  ;;  %v994_v56 = vmax.f32 %v985_v40, %v993_v36 }
 0x151   : > { %v935_v35 = vadd.f32 %v911_v30, %v895_v43  ;;  %v951_v2 = vrot.slane %v834_v12, 3  ;;  %v986_v4 = vsel %vm982_vm3, %v975_v39, -inf  ;;  %v649_v11 = vmax.f32 %v647_v24, %v648_v44 }
 0x152   : > { %v836_v28 = vpop.f32.mrf.mxu0  ;;  %v2906_v21 = vpop.f32.mrf.mxu1  ;;  %v614_v38 = vrot.slane %v613_v29, 1  ;;  %v999_v43 = vrot.slane %v986_v4, 4  ;;  %v659_v62 = vadd.f32 %v2888_v57, %v609_v13  ;;  %v620_v12 = vrot.slane %v619_v60, 1 }
 0x153   : > { %v912_v46 = vrot.slane %v836_v28, 2  ;;  %v976_v58 = vadd.f32 %v951_v2, %v935_v35  ;;  %v626_v15 = vrot.slane %v625_v49, 1  ;;  %v995_v23 = vrot.slane %v994_v56, 2 }
 0x154   : > { %v838_v53 = vpop.f32.mrf.mxu0  ;;  %v2913_v32 = vpop.f32.mrf.mxu1  ;;  %v615_v47 = vmax.f32 %v613_v29, %v614_v38  ;;  %v1000_v61 = vmax.f32 %v986_v4, %v999_v43  ;;  %v665_v27 = vadd.f32 %v2888_v57, %v645_v33  ;;  %v667_v24 = vmax.f32 %v659_v62, 0.0 }
 0x155   : > { %v936_v45 = vadd.f32 %v912_v46, %v2891_v9  ;;  %v952_v1 = vrot.slane %v838_v53, 3  ;;  %v987_v17 = vsel %vm982_vm3, %v976_v58, -inf  ;;  %v876_v40 = vrot.slane %v2860_v51, 1 }
 0x156   : > { %v842_v41 = vpop.f32.mrf.mxu0  ;;  %v2917_v42 = vpop.f32.mrf.mxu1  ;;  %v660_v3 = vadd.f32 %v2888_v57, %v615_v47  ;;  %v1005_v25 = vrot.slane %v987_v17, 4  ;;  %v650_v6 = vrot.slane %v649_v11, 1  ;;  %v621_v36 = vmax.f32 %v619_v60, %v620_v12 }
 0x157   : > { %v913_v18 = vrot.slane %v842_v41, 2  ;;  %v977_v63 = vadd.f32 %v952_v1, %v936_v45  ;;  %v627_v39 = vmax.f32 %v625_v49, %v626_v15  ;;  %v2945_v46 = vrot.slane %v671_v0, 4 }
 0x158   : > { %v844_v50 = vpop.f32.mrf.mxu0  ;;  %v2922_v52 = vpop.f32.mrf.mxu1  ;;  %v668_v19 = vmax.f32 %v660_v3, 0.0  ;;  %v899_v51 = vadd.f32 %v875_v34, %v2843_v54  ;;  %v996_v47 = vmax.f32 %v994_v56, %v995_v23  ;;  %v1006_v4 = vmax.f32 %v987_v17, %v1005_v25 }
 0x159   : > { %v937_v9 = vadd.f32 %v913_v18, %v2896_v5  ;;  %v953_v26 = vrot.slane %v844_v50, 3  ;;  %v988_v13 = vsel %vm982_vm3, %v977_v63, -inf  ;;  %v1001_v5 = vrot.slane %v1000_v61, 2 }
 0x15a   : > { %v846_v10 = vpop.f32.mrf.mxu0  ;;  %v2927_v8 = vpop.f32.mrf.mxu1  ;;  %v1574_v29 = vrot.slane %v668_v19, 7  ;;  %v2948_v60 = vrot.slane %v672_v48, 3  ;;  %v673_v50 = vmax.f32 %v665_v27, 0.0  ;;  %v1011_v33 = vrot.slane %v988_v13, 4 }
 0x15b   : > { %v978_v38 = vadd.f32 %v953_v26, %v937_v9  ;;  %v914_v41 = vrot.slane %v846_v10, 2  ;;  %v651_v62 = vmax.f32 %v649_v11, %v650_v6  ;;  %v900_v3 = vadd.f32 %v876_v40, %v2853_v16 }
 0x15c   : > { %v848_v20 = vpop.f32.mrf.mxu0  ;;  %v2931_v28 = vpop.f32.mrf.mxu1  ;;  %v2941_v35 = vsel %vm1575_vm4, %v1574_v29, %v667_v24  ;;  %v661_v54 = vadd.f32 %v2888_v57, %v621_v36  ;;  %v662_v34 = vadd.f32 %v2888_v57, %v627_v39  ;;  %v1002_v48 = vmax.f32 %v1000_v61, %v1001_v5 }
 0x15d   : > { %v938_v49 = vadd.f32 %v914_v41, %v2904_v55  ;;  %v989_v0 = vsel %vm982_vm3, %v978_v38, -inf  ;;  %v954_v45 = vrot.slane %v848_v20, 3  ;;  %v997_v55 = vrot.slane %v996_v47, 1 }
 0x15e   : > { %v852_v30 = vpop.f32.mrf.mxu0  ;;  %v2936_v53 = vpop.f32.mrf.mxu1  ;;  %v1007_v12 = vrot.slane %v1006_v4, 2  ;;  %v2960_v11 = vrot.slane %v673_v50, 2  ;;  %v1012_v16 = vmax.f32 %v988_v13, %v1011_v33  ;;  %v1017_v15 = vrot.slane %v989_v0, 4 }
 0x15f   : > { %v915_v56 = vrot.slane %v852_v30, 2  ;;  %v979_v17 = vadd.f32 %v954_v45, %v938_v49  ;;  %v2967_v23 = vadd.f32 %v2888_v57, %v651_v62  ;;  %v1331_v61 = vrot.slane %v2873_v37, 1  ;;  %v2980_v37 = vld [vmem:[%s3135_s2 + $0x1] ss:$0 sm:$0xff] }
 0x160   : > { %v854_v44 = vpop.f32.mrf.mxu0  ;;  %v2943_v2 = vpop.f32.mrf.mxu1  ;;  %v669_v26 = vmax.f32 %v661_v54, 0.0  ;;  %v1003_v27 = vrot.slane %v1002_v48, 1  ;;  %v670_v6 = vmax.f32 %v662_v34, 0.0  ;;  %v998_v36 = vmax.f32 %v996_v47, %v997_v55 }
 0x161   : > { %v955_v18 = vrot.slane %v854_v44, 3  ;;  %v939_v19 = vadd.f32 %v915_v56, %v899_v51  ;;  %v990_v25 = vsel %vm982_vm3, %v979_v17, -inf  ;;  %v1332_v13 = vrot.slane %v2893_v59, 1 }
 0x162   : > { %v856_v43 = vpop.f32.mrf.mxu0  ;;  %v2951_v58 = vpop.f32.mrf.mxu1  ;;  %v1023_v24 = vrot.slane %v990_v25, 4  ;;  %v1008_v57 = vmax.f32 %v1006_v4, %v1007_v12  ;;  %v1013_v38 = vrot.slane %v1012_v16, 2  ;;  %v1018_v39 = vmax.f32 %v989_v0, %v1017_v15 }
 0x163   : > { %v916_v9 = vrot.slane %v856_v43, 2  ;;  %v980_v29 = vadd.f32 %v955_v18, %v939_v19  ;;  %v1333_v50 = vrot.slane %v2906_v21, 1  ;;  %v1334_v47 = vrot.slane %v2917_v42, 1 }
 0x164   : > { %v858_v1 = vpop.f32.mrf.mxu0  ;;  %v2958_v10 = vpop.f32.mrf.mxu1  ;;  %v1024_v59 = vmax.f32 %v990_v25, %v1023_v24  ;;  %v1355_v33 = vadd.f32 %v1331_v61, %v2865_v31  ;;  %v1004_v49 = vmax.f32 %v1002_v48, %v1003_v27  ;;  %v1335_v43 = vrot.slane %v2927_v8, 1 }
 0x165   : > { %v991_v5 = vsel %vm982_vm3, %v980_v29, -inf  ;;  %v940_v41 = vadd.f32 %v916_v9, %v900_v3  ;;  %v956_v62 = vrot.slane %v858_v1, 3  ;;  %v2990_v45 = vrot.slane %v669_v26, 6 }
 0x166   : > { %v2962_v63 = vpop.f32.mrf.mxu1  ;;  %v2964_v20 = vpop.f32.mrf.mxu0  ;;  %v1029_v4 = vrot.slane %v991_v5, 4  ;;  %v2992_v54 = vrot.slane %v670_v6, 5  ;;  %v2995_v3 = vadd.f32 %v2980_v37, %v998_v36  ;;  %v1356_v21 = vadd.f32 %v1332_v13, %v2880_v22 }
 0x167   : > { %v1009_v42 = vrot.slane %v1008_v57, 1  ;;  %v1014_v56 = vmax.f32 %v1012_v16, %v1013_v38  ;;  %v1019_v55 = vrot.slane %v1018_v39, 2  ;;  %v981_v31 = vadd.f32 %v956_v62, %v940_v41 }
 0x168   : > { %v2972_v40 = vpop.f32.mrf.mxu0  ;;  %v2974_v30 = vpop.f32.mrf.mxu1  ;;  %v1357_v8 = vadd.f32 %v1333_v50, %v2898_v14  ;;  %v1358_v1 = vadd.f32 %v1334_v47, %v2913_v32  ;;  %v1025_v12 = vrot.slane %v1024_v59, 2  ;;  %v1030_v17 = vmax.f32 %v991_v5, %v1029_v4 }
 0x169   : > { %v3003_v18 = vadd.f32 %v2980_v37, %v1004_v49  ;;  %v1359_v15 = vadd.f32 %v1335_v43, %v2922_v52  ;;  %v1336_v22 = vrot.slane %v2936_v53, 1  ;;  %v992_v19 = vsel %vm982_vm3, %v981_v31, -inf }
 0x16a   : > { %v1223_v44 = vpop.f32.mrf.mxu0  ;;  %v2984_v51 = vpop.f32.mrf.mxu1  ;;  %v1056_v61 = vmax.f32 %v2995_v3, 0.0  ;;  %v1035_v25 = vrot.slane %v992_v19, 4  ;;  %v1371_v14 = vrot.slane %v2964_v20, 2  ;;  %v1010_v26 = vmax.f32 %v1008_v57, %v1009_v42 }
 0x16b   : > { %v1372_v9 = vrot.slane %v1223_v44, 2  ;;  %v1015_v27 = vrot.slane %v1014_v56, 1  ;;  %v1020_v24 = vmax.f32 %v1018_v39, %v1019_v55  ;;  %v1026_v36 = vmax.f32 %v1024_v59, %v1025_v12 }
 0x16c   : > { %v1225_v0 = vpop.f32.mrf.mxu0  ;;  %v2998_v34 = vpop.f32.mrf.mxu1  ;;  %v1031_v52 = vrot.slane %v1030_v17, 2  ;;  %v1036_v13 = vmax.f32 %v992_v19, %v1035_v25  ;;  %v1057_v5 = vmax.f32 %v3003_v18, 0.0  ;;  %v1360_v41 = vadd.f32 %v1336_v22, %v2931_v28 }
 0x16d   : > { %v1412_v29 = vrot.slane %v1225_v0, 3  ;;  %v1396_v53 = vadd.f32 %v1372_v9, %v1356_v21  ;;  %v1411_v50 = vrot.slane %v2972_v40, 3  ;;  %v1395_v44 = vadd.f32 %v1371_v14, %v1355_v33 }
 0x16e   : > { %v1229_v48 = vpop.f32.mrf.mxu0  ;;  %v1295_v32 = vpop.f32.mrf.mxu1  ;;  %v1037_v59 = vrot.slane %v1036_v13, 2  ;;  %v1453_v49 = vrot.slane %v2974_v30, 4  ;;  %v1016_v21 = vmax.f32 %v1014_v56, %v1015_v27  ;;  %v1021_v42 = vrot.slane %v1020_v24, 1 }
 0x16f   : > { %v1373_v20 = vrot.slane %v1229_v48, 2  ;;  %v1436_v39 = vadd.f32 %v1412_v29, %v1396_v53  ;;  %v1452_v47 = vrot.slane %v1295_v32, 4  ;;  %v1027_v55 = vrot.slane %v1026_v36, 1 }
 0x170   : > { %v1231_v16 = vpop.f32.mrf.mxu0  ;;  %v3011_v38 = vpop.f32.mrf.mxu1  ;;  %v1032_v28 = vmax.f32 %v1030_v17, %v1031_v52  ;;  %v1454_v40 = vrot.slane %v2998_v34, 4  ;;  %v1435_v22 = vadd.f32 %v1411_v50, %v1395_v44  ;;  %v1451_v19 = vrot.slane %v2984_v51, 4 }
 0x171   : > { %v1413_v4 = vrot.slane %v1231_v16, 3  ;;  %v1397_v43 = vadd.f32 %v1373_v20, %v1357_v8  ;;  %v1477_v16 = vadd.f32 %v1452_v47, %v1436_v39  ;;  %v1038_v30 = vmax.f32 %v1036_v13, %v1037_v59 }
 0x172   : > { %v1233_v6 = vpop.f32.mrf.mxu0  ;;  %v1308_v31 = vpop.f32.mrf.mxu1  ;;  %v1050_v32 = vadd.f32 %v2980_v37, %v1010_v26  ;;  %v1051_v17 = vadd.f32 %v2980_v37, %v1016_v21  ;;  %v1022_v27 = vmax.f32 %v1020_v24, %v1021_v42  ;;  %v1476_v50 = vadd.f32 %v1451_v19, %v1435_v22 }
 0x173   : > { %v1374_v62 = vrot.slane %v1233_v6, 2  ;;  %v1437_v12 = vadd.f32 %v1413_v4, %v1397_v43  ;;  %v1033_v6 = vrot.slane %v1032_v28, 1  ;;  %v1488_v13 = vsel %vm1484_vm5, %v1477_v16, -inf }
 0x174   : > { %v1235_v57 = vpop.f32.mrf.mxu0  ;;  %v3022_v29 = vpop.f32.mrf.mxu1  ;;  %v1039_v26 = vrot.slane %v1038_v30, 1  ;;  %v1058_v39 = vmax.f32 %v1050_v32, 0.0  ;;  %v1337_v47 = vrot.slane %v2951_v58, 1  ;;  %v1501_v43 = vrot.slane %v1488_v13, 4 }
 0x175   : > { %v1398_v48 = vadd.f32 %v1374_v62, %v1358_v1  ;;  %v1414_v18 = vrot.slane %v1235_v57, 3  ;;  %v1478_v8 = vadd.f32 %v1453_v49, %v1437_v12  ;;  %v1028_v1 = vmax.f32 %v1026_v36, %v1027_v55 }
 0x176   : > { %v1239_v0 = vpop.f32.mrf.mxu0  ;;  %v1455_v57 = vrot.slane %v1308_v31, 4  ;;  %v1604_v36 = vrot.slane %v1057_v5, 7  ;;  %v1311_v59 = vpop.f32.mrf.mxu1  ;;  %v1059_v49 = vmax.f32 %v1051_v17, 0.0  ;;  %v1052_v21 = vadd.f32 %v2980_v37, %v1022_v27 }
 0x177   : > { %v1375_v25 = vrot.slane %v1239_v0, 2  ;;  %v1438_v14 = vadd.f32 %v1414_v18, %v1398_v48  ;;  %v1489_v24 = vsel %vm1484_vm5, %v1478_v8, -inf  ;;  %v1053_v58 = vadd.f32 %v2980_v37, %v1028_v1 }
 0x178   : > { %v1241_v33 = vpop.f32.mrf.mxu0  ;;  %v1507_v42 = vrot.slane %v1489_v24, 4  ;;  %v1034_v55 = vmax.f32 %v1032_v28, %v1033_v6  ;;  %v1040_v31 = vmax.f32 %v1038_v30, %v1039_v26  ;;  %v1456_v12 = vrot.slane %v1311_v59, 4 }
 0x179   : > { %v1415_v9 = vrot.slane %v1241_v33, 3  ;;  %v1399_v34 = vadd.f32 %v1375_v25, %v1359_v15  ;;  %v1479_v52 = vadd.f32 %v1454_v40, %v1438_v14  ;;  %v1605_v48 = vsel %vm1575_vm4, %v1604_v36, %v1056_v61 }
 0x17a   : > { %v1243_v56 = vpop.f32.mrf.mxu0  ;;  %v1361_v18 = vadd.f32 %v1337_v47, %v2943_v2  ;;  %v1606_v19 = vrot.slane %v1058_v39, 6  ;;  %v1502_v25 = vmax.f32 %v1488_v13, %v1501_v43  ;;  %v1608_v14 = vrot.slane %v1059_v49, 5 }
 0x17b   : > { %v1376_v53 = vrot.slane %v1243_v56, 2  ;;  %v1439_v20 = vadd.f32 %v1415_v9, %v1399_v34  ;;  %v1490_v62 = vsel %vm1484_vm5, %v1479_v52, -inf  ;;  %v1060_v9 = vmax.f32 %v1052_v21, 0.0 }
 0x17c   : > { %v1245_v51 = vpop.f32.mrf.mxu0  ;;  %v1513_v33 = vrot.slane %v1490_v62, 4  ;;  %v1338_v28 = vrot.slane %v2962_v63, 1  ;;  %v1508_v30 = vmax.f32 %v1489_v24, %v1507_v42  ;;  %v1061_v56 = vmax.f32 %v1053_v58, 0.0 }
 0x17d   : > { %v1400_v15 = vadd.f32 %v1376_v53, %v1360_v41  ;;  %v1416_v44 = vrot.slane %v1245_v51, 3  ;;  %v1480_v4 = vadd.f32 %v1455_v57, %v1439_v20  ;;  %v1487_v41 = vsel %vm1484_vm5, %v1476_v50, -inf }
 0x17e   : > { %v1249_v40 = vpop.f32.mrf.mxu0  ;;  %v1495_v16 = vrot.slane %v1487_v41, 4  ;;  %v1054_v32 = vadd.f32 %v2980_v37, %v1034_v55  ;;  %v1055_v2 = vadd.f32 %v2980_v37, %v1040_v31  ;;  %v1514_v17 = vmax.f32 %v1490_v62, %v1513_v33 }
 0x17f   : > { %v1440_v0 = vadd.f32 %v1416_v44, %v1400_v15  ;;  %v1491_v5 = vsel %vm1484_vm5, %v1480_v4, -inf  ;;  %v1579_v1 = vsel %vm1578_vm6, %v2990_v45, %v2941_v35  ;;  %v1503_v63 = vrot.slane %v1502_v25, 2 }
 0x180   : > { %v1519_v22 = vrot.slane %v1491_v5, 4  ;;  %v1251_v61 = vpop.f32.mrf.mxu0  ;;  %v1496_v6 = vmax.f32 %v1487_v41, %v1495_v16  ;;  %v1377_v52 = vrot.slane %v1249_v40, 2  ;;  %v1582_v53 = vsel %vm1581_vm7, %v2992_v54, %v1579_v1  ;;  %v2099_v1 = vld [vmem:[%s3135_s2 + $0x2] ss:$0 sm:$0xff] }
 0x181   : > { %v1481_v8 = vadd.f32 %v1456_v12, %v1440_v0  ;;  %v1610_v51 = vrot.slane %v1060_v9, 4  ;;  %v1509_v50 = vrot.slane %v1508_v30, 2  ;;  %v1585_v37 = vsel %vm1584_vm8, %v2945_v46, %v1582_v53 }
 0x182   : > { %v1520_v27 = vmax.f32 %v1491_v5, %v1519_v22  ;;  %v674_v20 = vmax.f32 %v2967_v23, 0.0  ;;  %v1062_v57 = vmax.f32 %v1054_v32, 0.0  ;;  %v1063_v26 = vmax.f32 %v1055_v2, 0.0  ;;  %v1253_v35 = vpop.f32.mrf.mxu0 }
 0x183   : > { %v1492_v3 = vsel %vm1484_vm5, %v1481_v8, -inf  ;;  %v1588_v24 = vsel %vm1587_vm9, %v2948_v60, %v1585_v37  ;;  %v1612_v45 = vrot.slane %v1061_v56, 3  ;;  %v1362_v15 = vadd.f32 %v1338_v28, %v2958_v10 }
 0x184   : > { %v1525_v34 = vrot.slane %v1492_v3, 4  ;;  %v1515_v44 = vrot.slane %v1514_v17, 2  ;;  %v1521_v36 = vrot.slane %v1520_v27, 2  ;;  %v1497_v54 = vrot.slane %v1496_v6, 2  ;;  %v1255_v10 = vpop.f32.mrf.mxu0 }
 0x185   : > { %v1504_v39 = vmax.f32 %v1502_v25, %v1503_v63  ;;  %v1401_v47 = vadd.f32 %v1377_v52, %v1361_v18  ;;  %v1607_v4 = vsel %vm1578_vm6, %v1606_v19, %v1605_v48  ;;  %v1510_v59 = vmax.f32 %v1508_v30, %v1509_v50 }
 0x186   : > { %v1526_v13 = vmax.f32 %v1492_v3, %v1525_v34  ;;  %v1591_v23 = vsel %vm1590_vm10, %v2960_v11, %v1588_v24  ;;  %v1609_v49 = vsel %vm1581_vm7, %v1608_v14, %v1607_v4  ;;  %v1592_v43 = vrot.slane %v674_v20, 1 }
 0x187   : > { %v1611_v60 = vsel %vm1584_vm8, %v1610_v51, %v1609_v49  ;;  %v1614_v62 = vrot.slane %v1062_v57, 2  ;;  %v1616_v0 = vrot.slane %v1063_v26, 1  ;;  %v1516_v21 = vmax.f32 %v1514_v17, %v1515_v44 }
 0x188   : > { %v1527_v46 = vrot.slane %v1526_v13, 2  ;;  %v1457_v41 = vrot.slane %v3011_v38, 4  ;;  %v1522_v42 = vmax.f32 %v1520_v27, %v1521_v36  ;;  %v1613_v5 = vsel %vm1587_vm9, %v1612_v45, %v1611_v60 }
 0x189   : > { %v1594_v58 = vsel %vm1593_vm11, %v1592_v43, %v1591_v23  ;;  %v1615_v55 = vsel %vm1590_vm10, %v1614_v62, %v1613_v5  ;;  %v1417_v31 = vrot.slane %v1251_v61, 3  ;;  %v1378_v11 = vrot.slane %v1253_v35, 2 }
 0x18a   : > { %v1505_v40 = vrot.slane %v1504_v39, 1  ;;  %v1528_v12 = vmax.f32 %v1526_v13, %v1527_v46  ;;  %v1617_v48 = vsel %vm1593_vm11, %v1616_v0, %v1615_v55  ;;  %v1418_v18 = vrot.slane %v1255_v10, 3 }
 0x18b   : > { %v1511_v33 = vrot.slane %v1510_v59, 1  ;;  %v1643_v22 = vpack.c.bf16 %v1617_v48, %v1617_v48  ;;  %v1441_v19 = vadd.f32 %v1417_v31, %v1401_v47  ;;  %v1402_v16 = vadd.f32 %v1378_v11, %v1362_v15 }
 0x18c   : > { %v1498_v25 = vmax.f32 %v1496_v6, %v1497_v54  ;;  %v1517_v38 = vrot.slane %v1516_v21, 1  ;;  %v1642_v8 = vpack.c.bf16 %v1594_v58, %v1594_v58  ;;  %v1523_v14 = vrot.slane %v1522_v42, 1 }
 0x18d   : > { %v1458_v9 = vrot.slane %v3022_v29, 4  ;;  %1876 = vmatprep.mubr.bf16.mxu0 %v1643_v22  ;;  %v1482_v28 = vadd.f32 %v1457_v41, %v1441_v19  ;;  %v1442_v30 = vadd.f32 %v1418_v18, %v1402_v16  ;;  %v1506_v56 = vmax.f32 %v1504_v39, %v1505_v40 }
 0x18e   : > { %v1529_v32 = vrot.slane %v1528_v12, 1  ;;  %1877 = vmatmul.mubr.bf16.vlgmr.msra.gmra.mxu0 %v1642_v8  ;;  %v1512_v3 = vmax.f32 %v1510_v59, %v1511_v33  ;;  %v1499_v17 = vrot.slane %v1498_v25, 1  ;;  %v1518_v27 = vmax.f32 %v1516_v21, %v1517_v38 }
 0x18f   : > { %v1493_v2 = vsel %vm1484_vm5, %v1482_v28, -inf  ;;  %v1483_v61 = vadd.f32 %v1458_v9, %v1442_v30  ;;  %v1524_v6 = vmax.f32 %v1522_v42, %v1523_v14  ;;  %v1551_v63 = vadd.f32 %v2099_v1, %v1506_v56  ;;  %v2100_v14 = vld [vmem:[%s3137_s4] ss:$0 sm:$0xff] }
 0x190   : > { %v1531_v34 = vrot.slane %v1493_v2, 4  ;;  %v1530_v52 = vmax.f32 %v1528_v12, %v1529_v32  ;;  %v1552_v50 = vadd.f32 %v2099_v1, %v1512_v3  ;;  %v1500_v13 = vmax.f32 %v1498_v25, %v1499_v17 }
 0x191   : > { %v1494_v29 = vsel %vm1484_vm5, %v1483_v61, -inf  ;;  %v1553_v37 = vadd.f32 %v2099_v1, %v1518_v27  ;;  %v1554_v26 = vadd.f32 %v2099_v1, %v1524_v6  ;;  %v1559_v24 = vmax.f32 %v1551_v63, 0.0 }
 0x192   : > { %v1532_v53 = vmax.f32 %v1493_v2, %v1531_v34  ;;  %v1537_v51 = vrot.slane %v1494_v29, 4  ;;  %v1555_v35 = vadd.f32 %v2099_v1, %v1530_v52  ;;  %v1560_v44 = vmax.f32 %v1552_v50, 0.0 }
 0x193   : > { %v1550_v36 = vadd.f32 %v2099_v1, %v1500_v13  ;;  %v1561_v54 = vmax.f32 %v1553_v37, 0.0  ;;  %v1562_v47 = vmax.f32 %v1554_v26, 0.0  ;;  %v1627_v4 = vrot.slane %v1559_v24, 7 }
 0x194   : > { %v1533_v20 = vrot.slane %v1532_v53, 2  ;;  %v1538_v57 = vmax.f32 %v1494_v29, %v1537_v51  ;;  %v1563_v59 = vmax.f32 %v1555_v35, 0.0  ;;  %v1629_v49 = vrot.slane %v1560_v44, 6 }
 0x195   : > { %v1558_v43 = vmax.f32 %v1550_v36, 0.0  ;;  %v1631_v60 = vrot.slane %v1561_v54, 5  ;;  %v1633_v10 = vrot.slane %v1562_v47, 4 }
 0x196   : > { %v1534_v45 = vmax.f32 %v1532_v53, %v1533_v20  ;;  %v1539_v15 = vrot.slane %v1538_v57, 2  ;;  %v1635_v41 = vrot.slane %v1563_v59, 3 }
 0x197   : > { %v1628_v21 = vsel %vm1575_vm4, %v1627_v4, %v1558_v43 }
 0x198   : > { %v1535_v39 = vrot.slane %v1534_v45, 1  ;;  %v1540_v7 = vmax.f32 %v1538_v57, %v1539_v15  ;;  %v1630_v58 = vsel %vm1578_vm6, %v1629_v49, %v1628_v21 }
 0x199   : > { %v1632_v55 = vsel %vm1581_vm7, %v1631_v60, %v1630_v58 }
 0x19a   : > { %v1536_v46 = vmax.f32 %v1534_v45, %v1535_v39  ;;  %v1541_v23 = vrot.slane %v1540_v7, 1  ;;  %v1634_v40 = vsel %vm1584_vm8, %v1633_v10, %v1632_v55 }
 0x19b   : > { %v1636_v12 = vsel %vm1587_vm9, %v1635_v41, %v1634_v40 }
 0x19c   : > { %v1556_v62 = vadd.f32 %v2099_v1, %v1536_v46  ;;  %v1542_v0 = vmax.f32 %v1540_v7, %v1541_v23 }
 0x19e   : > { %v1564_v42 = vmax.f32 %v1556_v62, 0.0  ;;  %v1557_v5 = vadd.f32 %v2099_v1, %v1542_v0 }
 0x1a0   : > { %v1637_v31 = vrot.slane %v1564_v42, 2  ;;  %v1565_v11 = vmax.f32 %v1557_v5, 0.0 }
 0x1a2   : > { %v1639_v48 = vrot.slane %v1565_v11, 1  ;;  %v1638_v18 = vsel %vm1590_vm10, %v1637_v31, %v1636_v12 }
 0x1a4   : > { %v1640_v33 = vsel %vm1593_vm11, %v1639_v48, %v1638_v18 }
 0x1a5   : > { %v1644_v22 = vpack.c.bf16 %v1640_v33, %v1640_v33 }
 0x1a7   : > { %2214 = vmatmul.mubr.bf16.vlgmr.msra.gmra.mxu1 %v1644_v22 }
 0x24e   : > { %v2158_v19 = vpop.f32.mrf.mxu0 }
 0x250   : > { %v2159_v16 = vpop.f32.mrf.mxu0 }
 0x251   : > { %v2160_v8 = vadd.f32 %v2159_v16, %v2158_v19 }
 0x252   : > { %v2161_v25 = vpop.f32.mrf.mxu0 }
 0x253   : > { %v1879_v9 = vadd.f32 %v2160_v8, %v2100_v14 }
 0x254   : > { %v2162_v38 = vpop.f32.mrf.mxu0 }
 0x267   : > { %v1918_v28 = vpop.f32.mrf.mxu1 }
 0x268   : > { %v1919_v30 = vadd.f32 %v1918_v28, %v1879_v9 }
 0x269   : > { %v2215_v56 = vpop.f32.mrf.mxu1 }
 0x26a   : > { %1924 = vst [vmem:[%s271_s27] sm:$0xff] %v1919_v30 }
 0x26b   : > { %v1921_v32 = vpop.f32.mrf.mxu1 }
 0x26c   : > { %2452 = shalt.err (!%p2449_p9)
}
 0x26d   : > { %s2453_s12 = scalar_lea.hbm %s3090_s8, 128  ;;  %s2457_s16 = scalar_lea.hbm %s3138_s5, 256 }
 0x26e   : > { %p2454_p13 = scmp.ne.s32.totalorder %s3090_s8, %s2453_s12  ;;  %p2458_p4 = scmp.lt.s32.totalorder %s3090_s8, %s3138_s5 }
 0x26f   : > { %p2459_p8 = scmp.lt.s32.totalorder %s2457_s16, %s2453_s12 }
 0x270   : > { %p2455_p5 = pnand %p2454_p13, %p3156_p10 }
 0x271   : > { %p2460_p7 = por %p2459_p8, %p2458_p4 }
 0x272   : > { %p2456_p0 = pneg %p2455_p5 }
 0x274   : > { %p2461_p11 = pnand %p2460_p7, %p2456_p0 }
 0x276   : > { %2464 = shalt.err (!%p2461_p11)
}
 0x277   : > { %2231 = dma.vmem_to_hbm [thread:$0]  (%p3156_p10), %s3092_s23, 128, %s3090_s8, %s1926_s24   ;;  %v2216_v3 = vpop.f32.mrf.mxu1 }
 0x278 PF: > { %s1951_s11 = sand.u32 1, %s2495_s18   ;;  %p3157_p1 = scmp.ne.s32.totalorder %s3145_s25, 0 }
 0x279   : > { %p3158_p2 = scmp.ge.s32.totalorder %s2507_s21, 2  ;;  %s1952_s27 = scalar_lea.sflag [#allocation4], %s1951_s11 }
 0x27b   : > { %p2245_p6 = pnand %p3158_p2, %p3157_p1 }
 0x27d   : > { %p2246_p12 = pneg %p2245_p6 }
 0x27f   : > { %2490 = dma.done.wait (%p2246_p12), %s1952_s27, 128  }
 0x280   : > { %2492 = vsyncadd (%p2246_p12), %s1952_s27, 4294967168  ;;  %p19_p3 = scmp.ge.s32.totalorder %s2625_s17, 4   ;;  %s3159_s18 = smov %s2499_s19 }
 0x281   : > { %s3160_s19 = smov %s2503_s20  ;;  %s3161_s20 = smov %s2634_s28 }
 0x282   : > { %s3162_s21 = smov %s2625_s17  ;;  %21 = sbr.rel (!%p19_p3) target bundleno = 6 (0x6), region = 93 }
 0x287   :  { %1957 = vsyncpa [#allocation3], 1 }
 0x288   :  { %1959 = vsyncpa [#allocation3 + $0x1], 1 }
 0x289   :  { %1960 = vsyncpa [#allocation6], 1 }
 0x28a   :  { %1961 = vsyncpa [#allocation4], 1 }
 0x28b   :  { %1963 = vsyncpa [#allocation4 + $0x1], 1 }

</bundles_post_ra>
